<compile_context>
chip_gen: v6e
topology: v6e:2x2x1
jax: 0.10.0
libtpu: 0.0.40
codegen_flags: <defaults>
</compile_context>

<pallas_src>
import functools

import jax
import jax.numpy as jnp
from jax.experimental import pallas as pl
from jax.experimental.pallas import tpu as pltpu

# ----------------------------- config ---------------------------------------
B = 2
IMG_C, IMG_H, IMG_W = 3, 16, 16          # input image (NCHW): (2, 3, 16, 16)
PATCH = 4                                 # encoder downsample factor
P1, P2 = IMG_H // PATCH, IMG_W // PATCH   # latent spatial = 4 x 4
LATENT_DIM = 128                          # codebook vector dim (lane-dense)
NUM_CODEBOOK = 128                        # args.num_codebook_vectors (padded)
SOS_TOKEN = 0                             # args.sos_token
PKEEP = 0.5                               # args.pkeep

# GPT config (real: 24 / 16 / 1024 / 512 — scaled down, lane-dense)
N_LAYER, N_HEAD, N_EMBD, BLOCK_SIZE = 2, 2, 128, 512
VOCAB = NUM_CODEBOOK
HEAD_DIM = N_EMBD // N_HEAD               # 64
SEQ = P1 * P2                             # tokens fed to GPT = 16
M_ROWS = B * SEQ                          # residual slab rows = 32

ENC_IN = PATCH * PATCH * IMG_C            # 48 real patch features
ENC_IN_PAD = 128                          # contracting dim padded to lane width
NPAD = 128                                # lane-dense row padding for indices

NEG = -1e30                               # f32-safe additive mask value
_VMEM = 64 * 1024 * 1024


# ----------------------------- Pallas kernels -------------------------------
def _ln(x, g, b, eps=1e-5):
    mu = jnp.mean(x, axis=-1, keepdims=True)
    var = jnp.mean((x - mu) * (x - mu), axis=-1, keepdims=True)
    return (x - mu) * jax.lax.rsqrt(var + eps) * g + b


def _gpt_fused_kernel(xemb_ref,
                      ln1g_ref, ln1b_ref, wqkv_ref, bqkv_ref,
                      wo_ref, bo_ref,
                      ln2g_ref, ln2b_ref, w1_ref, b1_ref, w2_ref, b2_ref,
                      lnfg_ref, lnfb_ref, headw_ref,
                      logits_ref,
                      x_sc):
    """One grid step == one transformer block; residual slab stays in VMEM."""
    layer = pl.program_id(0)

    @pl.when(layer == 0)
    def _():
        x_sc[...] = xemb_ref[...]

    x = x_sc[...]                                             # (M, D) f32

    # ---- LN1 + fused QKV projection (bf16 MXU, f32 accumulation) ----
    h = _ln(x, ln1g_ref[0], ln1b_ref[0])
    qkv = jnp.dot(h.astype(jnp.bfloat16), wqkv_ref[0],
                  preferred_element_type=jnp.float32) + bqkv_ref[0]   # (M, 3D)

    # ---- causal multi-head attention, heads sliced in-kernel ----
    rows = jax.lax.broadcasted_iota(jnp.int32, (SEQ, SEQ), 0)
    cols = jax.lax.broadcasted_iota(jnp.int32, (SEQ, SEQ), 1)
    cmask = jnp.where(cols <= rows, 0.0, NEG).astype(jnp.float32)
    scale = 1.0 / (HEAD_DIM ** 0.5)

    batch_outs = []
    for bb in range(B):
        r0 = bb * SEQ
        head_outs = []
        for hh in range(N_HEAD):
            c0 = hh * HEAD_DIM
            qh = qkv[r0:r0 + SEQ, c0:c0 + HEAD_DIM]
            kh = qkv[r0:r0 + SEQ, N_EMBD + c0:N_EMBD + c0 + HEAD_DIM]
            vh = qkv[r0:r0 + SEQ, 2 * N_EMBD + c0:2 * N_EMBD + c0 + HEAD_DIM]
            s = jax.lax.dot_general(
                qh.astype(jnp.bfloat16), kh.astype(jnp.bfloat16),
                (((1,), (1,)), ((), ())),
                preferred_element_type=jnp.float32) * scale + cmask
            m = jnp.max(s, axis=-1, keepdims=True)
            p = jnp.exp(s - m)
            l = jnp.sum(p, axis=-1, keepdims=True)
            o = jnp.dot(p.astype(jnp.bfloat16), vh.astype(jnp.bfloat16),
                        preferred_element_type=jnp.float32)
            head_outs.append(o * pl.reciprocal(l, approx=True))
        batch_outs.append(jnp.concatenate(head_outs, axis=1))          # (T, D)
    att = jnp.concatenate(batch_outs, axis=0)                          # (M, D)

    # ---- output projection + residual ----
    x = x + jnp.dot(att.astype(jnp.bfloat16), wo_ref[0],
                    preferred_element_type=jnp.float32) + bo_ref[0]

    # ---- LN2 + MLP (GELU) + residual ----
    h2 = _ln(x, ln2g_ref[0], ln2b_ref[0])
    h2 = jnp.dot(h2.astype(jnp.bfloat16), w1_ref[0],
                 preferred_element_type=jnp.float32) + b1_ref[0]
    h2 = jax.nn.gelu(h2, approximate=True)                   # minGPT tanh GELU
    h2 = jnp.dot(h2.astype(jnp.bfloat16), w2_ref[0],
                 preferred_element_type=jnp.float32) + b2_ref[0]
    x = x + h2
    x_sc[...] = x

    # ---- final LayerNorm + LM head, only on the last layer ----
    @pl.when(layer == pl.num_programs(0) - 1)
    def _():
        hf = _ln(x, lnfg_ref[...], lnfb_ref[...])
        logits_ref[...] = jnp.dot(hf.astype(jnp.bfloat16), headw_ref[...],
                                  preferred_element_type=jnp.float32)


def _encode_quantize_kernel(p_ref, w_ref, b_ref, cb_ref, e2_ref, idx_ref):
    # Patchify-conv (as a matmul) fused with codebook nearest-neighbor search.
    z = jnp.dot(p_ref[...], w_ref[...],
                preferred_element_type=jnp.float32) + b_ref[...]       # (Np, D)
    z2 = jnp.sum(z * z, axis=-1, keepdims=True)                        # (Np, 1)
    ze = jax.lax.dot_general(z, cb_ref[...], (((1,), (1,)), ((), ())),
                             preferred_element_type=jnp.float32)       # (Np, K)
    dist = z2 - 2.0 * ze + e2_ref[...]                                 # (Np, K)
    idx_ref[...] = jnp.argmin(dist, axis=-1).astype(jnp.int32)[None, :]


# ----------------------------- kernel wrappers -------------------------------
def _row(shape):
    return pl.BlockSpec(shape, lambda i: (0,) * len(shape))


def pl_gpt_forward(gpt, x_emb):
    """All layers + final LN + head in one pallas_call (layer = grid axis)."""
    M, D = x_emb.shape
    HID = 4 * N_EMBD

    def lspec(*shape):                       # per-layer stacked weight/bias
        return pl.BlockSpec((1,) + shape, lambda l: (l, 0, 0))

    def cspec(*shape):                       # layer-invariant input / output
        n = len(shape)
        return pl.BlockSpec(shape, lambda l, n=n: (0,) * n)

    return pl.pallas_call(
        _gpt_fused_kernel,
        out_shape=jax.ShapeDtypeStruct((M, VOCAB), jnp.float32),
        grid=(N_LAYER,),
        in_specs=[
            cspec(M, D),
            lspec(1, D), lspec(1, D),
            lspec(D, 3 * D), lspec(1, 3 * D),
            lspec(D, D), lspec(1, D),
            lspec(1, D), lspec(1, D),
            lspec(D, HID), lspec(1, HID),
            lspec(HID, D), lspec(1, D),
            cspec(1, D), cspec(1, D),
            cspec(D, VOCAB),
        ],
        out_specs=cspec(M, VOCAB),
        scratch_shapes=[pltpu.VMEM((M, D), jnp.float32)],   # residual stream
        compiler_params=pltpu.CompilerParams(
            dimension_semantics=("arbitrary",), vmem_limit_bytes=_VMEM),
    )(x_emb,
      gpt["ln1_g"], gpt["ln1_b"], gpt["wqkv"], gpt["bqkv"],
      gpt["wo"], gpt["bo"],
      gpt["ln2_g"], gpt["ln2_b"], gpt["w1"], gpt["b1"], gpt["w2"], gpt["b2"],
      gpt["lnf_g"], gpt["lnf_b"], gpt["head_w"])


def pl_encode_quantize(patches, enc_w, enc_b, codebook, cb_sq):
    Np, Kin = patches.shape
    D = enc_w.shape[1]
    K = codebook.shape[0]
    idx = pl.pallas_call(
        _encode_quantize_kernel,
        out_shape=jax.ShapeDtypeStruct((1, Np), jnp.int32),
        grid=(1,),
        in_specs=[_row((Np, Kin)), _row((Kin, D)), _row((1, D)),
                  _row((K, D)), _row((1, K))],
        out_specs=_row((1, Np)),
        compiler_params=pltpu.CompilerParams(
            dimension_semantics=("arbitrary",), vmem_limit_bytes=_VMEM),
    )(patches, enc_w, enc_b.reshape(1, D), codebook, cb_sq)
    return idx[0]


# ----------------------------- parameters ------------------------------------
def init_params(key):
    def nrm(k, shape, scale=0.02, dtype=jnp.bfloat16):
        return (scale * jax.random.normal(k, shape)).astype(dtype)

    keys = iter(jax.random.split(key, 32))
    params = {}
    # VQGAN encoder: one non-overlapping strided-conv (as matmul) to latent dim.
    # TODO(synk): real VQGAN has a deep resnet encoder/decoder + checkpoint load;
    # here it is a single strided-conv surrogate with synthetic weights.
    params["enc_w"] = nrm(next(keys), (ENC_IN_PAD, LATENT_DIM), 0.1, jnp.float32)
    params["enc_b"] = jnp.zeros((LATENT_DIM,), jnp.float32)
    params["codebook"] = nrm(next(keys), (NUM_CODEBOOK, LATENT_DIM), 1.0,
                             dtype=jnp.float32)

    L = N_LAYER
    gpt = {
        "wte": nrm(next(keys), (VOCAB, N_EMBD), dtype=jnp.float32),
        "wpe": nrm(next(keys), (BLOCK_SIZE, N_EMBD), dtype=jnp.float32),
        # per-layer weights stacked along axis 0 so the kernel can stream them
        "ln1_g": jnp.ones((L, 1, N_EMBD), jnp.float32),
        "ln1_b": jnp.zeros((L, 1, N_EMBD), jnp.float32),
        "wqkv": nrm(next(keys), (L, N_EMBD, 3 * N_EMBD)),
        "bqkv": jnp.zeros((L, 1, 3 * N_EMBD), jnp.float32),
        "wo": nrm(next(keys), (L, N_EMBD, N_EMBD)),
        "bo": jnp.zeros((L, 1, N_EMBD), jnp.float32),
        "ln2_g": jnp.ones((L, 1, N_EMBD), jnp.float32),
        "ln2_b": jnp.zeros((L, 1, N_EMBD), jnp.float32),
        "w1": nrm(next(keys), (L, N_EMBD, 4 * N_EMBD)),
        "b1": jnp.zeros((L, 1, 4 * N_EMBD), jnp.float32),
        "w2": nrm(next(keys), (L, 4 * N_EMBD, N_EMBD)),
        "b2": jnp.zeros((L, 1, N_EMBD), jnp.float32),
        "lnf_g": jnp.ones((1, N_EMBD), jnp.float32),
        "lnf_b": jnp.zeros((1, N_EMBD), jnp.float32),
        "head_w": nrm(next(keys), (N_EMBD, VOCAB)),
    }
    params["gpt"] = gpt
    return params


# ----------------------------- model pieces ----------------------------------
def vqgan_encode_to_z(params, x_nchw):
    """encode_to_z: image -> (quantized latents, codebook indices (B, p1*p2))."""
    x = jnp.transpose(x_nchw, (0, 2, 3, 1)).astype(jnp.float32)   # NCHW -> NHWC
    Bsz = x.shape[0]
    patches = x.reshape(Bsz, P1, PATCH, P2, PATCH, IMG_C)
    patches = patches.transpose(0, 1, 3, 2, 4, 5)
    patches = patches.reshape(Bsz * P1 * P2, ENC_IN)
    n = patches.shape[0]
    # pad rows to 128 (lane-dense index output) and contracting dim to 128
    patches_p = jnp.pad(patches, ((0, NPAD - n), (0, ENC_IN_PAD - ENC_IN)))
    cb = params["codebook"]
    cb_sq = jnp.sum(cb * cb, axis=-1)[None, :]        # hoisted out of the kernel
    idx_row = pl_encode_quantize(patches_p, params["enc_w"], params["enc_b"],
                                 cb, cb_sq)                        # (128,)
    indices = idx_row[:n].reshape(Bsz, -1)                         # .view(B, -1)
    quant_z = jnp.take(cb, indices, axis=0).reshape(Bsz, P1, P2, LATENT_DIM)
    return quant_z, indices


def gpt_forward(gpt, idx):
    Bsz, T = idx.shape
    tok = jnp.take(gpt["wte"], idx, axis=0)          # embedding gather (XLA glue)
    pos = gpt["wpe"][:T][None, :, :]
    x2d = (tok + pos).reshape(Bsz * T, N_EMBD).astype(jnp.float32)  # dropout: eval
    logits = pl_gpt_forward(gpt, x2d)
    return logits.reshape(Bsz, T, VOCAB)


def vqgan_transformer_forward(params, x, rng):
    """Mirrors VQGANTransformer.forward: returns (logits, indices)."""
    _, indices = vqgan_encode_to_z(params, x)                  # (B, p1*p2) int32
    Bsz = x.shape[0]
    sos_tokens = jnp.full((Bsz, 1), SOS_TOKEN, dtype=jnp.int32)
    k_mask, k_rand = jax.random.split(rng)
    mask = jax.random.bernoulli(k_mask, PKEEP, indices.shape).astype(jnp.int32)
    random_indices = jax.random.randint(k_rand, indices.shape, 0, VOCAB,
                                        dtype=jnp.int32)
    new_indices = mask * indices + (1 - mask) * random_indices
    new_indices = jnp.concatenate([sos_tokens, new_indices], axis=1)
    logits = gpt_forward(params["gpt"], new_indices[:, :-1])
    return logits, indices


# ----------------------------- main ------------------------------------------
if __name__ == "__main__":
    root = jax.random.PRNGKey(0)
    k_x, k_fwd = jax.random.split(root)
    x = jax.random.normal(k_x, (B, IMG_C, IMG_H, IMG_W), dtype=jnp.float32)

    params = init_params(jax.random.PRNGKey(1))

    fwd = jax.jit(functools.partial(vqgan_transformer_forward, params))
    logits, indices = fwd(x, k_fwd)
    jax.block_until_ready((logits, indices))

    assert logits.shape == (B, SEQ, VOCAB), logits.shape
    assert indices.shape == (B, P1 * P2), indices.shape
    assert bool(jnp.all(jnp.isfinite(logits)))
    assert bool(jnp.all((indices >= 0) & (indices < NUM_CODEBOOK)))
    print("KERNEL_OK")
</pallas_src>

<mosaic_0001>
module attributes {stable_mosaic.version = 11 : i64} {
  func.func @_encode_quantize_kernel(%arg0: i32, %arg1: memref<128x128xf32, #tpu.memory_space<vmem>>, %arg2: memref<128x128xf32, #tpu.memory_space<vmem>>, %arg3: memref<1x128xf32, #tpu.memory_space<vmem>>, %arg4: memref<128x128xf32, #tpu.memory_space<vmem>>, %arg5: memref<1x128xf32, #tpu.memory_space<vmem>>, %arg6: memref<1x128xi32, #tpu.memory_space<vmem>>) attributes {dimension_semantics = [#tpu.dimension_semantics<arbitrary>], iteration_bounds = array<i64: 1>, scalar_prefetch = 0 : i64, scratch_operands = 0 : i64, tpu.core_type = #tpu.core_type<tc>, window_params = [{pipeline_mode = #tpu.pipeline_mode<synchronous>, transform_indices = @transform_0, window_bounds = array<i64: 128, 128>}, {pipeline_mode = #tpu.pipeline_mode<synchronous>, transform_indices = @transform_1, window_bounds = array<i64: 128, 128>}, {pipeline_mode = #tpu.pipeline_mode<synchronous>, transform_indices = @transform_2, window_bounds = array<i64: 1, 128>}, {pipeline_mode = #tpu.pipeline_mode<synchronous>, transform_indices = @transform_3, window_bounds = array<i64: 128, 128>}, {pipeline_mode = #tpu.pipeline_mode<synchronous>, transform_indices = @transform_4, window_bounds = array<i64: 1, 128>}, {pipeline_mode = #tpu.pipeline_mode<synchronous>, transform_indices = @transform_5, window_bounds = array<i64: 1, 128>}]} {
    %c0 = arith.constant 0 : index
    %c0_0 = arith.constant 0 : index
    %0 = vector.load %arg1[%c0, %c0_0] : memref<128x128xf32, #tpu.memory_space<vmem>>, vector<128x128xf32>
    %c0_1 = arith.constant 0 : index
    %c0_2 = arith.constant 0 : index
    %1 = vector.load %arg2[%c0_1, %c0_2] : memref<128x128xf32, #tpu.memory_space<vmem>>, vector<128x128xf32>
    %cst = arith.constant dense<0.000000e+00> : vector<128x128xf32>
    %2 = tpu.matmul %0, %1, %cst {dimension_numbers = #tpu.dot_dimension_numbers<[1], [0], [0], [1], [0, 0, 1, 1], [], []>} : vector<128x128xf32>, vector<128x128xf32>, vector<128x128xf32> -> vector<128x128xf32>
    %c0_3 = arith.constant 0 : index
    %c0_4 = arith.constant 0 : index
    %3 = vector.load %arg3[%c0_3, %c0_4] : memref<1x128xf32, #tpu.memory_space<vmem>>, vector<1x128xf32>
    %4 = vector.broadcast %3 : vector<1x128xf32> to vector<128x128xf32>
    %5 = arith.addf %2, %4 : vector<128x128xf32>
    %6 = arith.mulf %5, %5 : vector<128x128xf32>
    %cst_5 = arith.constant dense<0.000000e+00> : vector<128xf32>
    %7 = vector.multi_reduction <add>, %6, %cst_5 [1] : vector<128x128xf32> to vector<128xf32>
    %8 = vector.shape_cast %7 : vector<128xf32> to vector<128x1xf32>
    %c0_6 = arith.constant 0 : index
    %c0_7 = arith.constant 0 : index
    %9 = vector.load %arg4[%c0_6, %c0_7] : memref<128x128xf32, #tpu.memory_space<vmem>>, vector<128x128xf32>
    %cst_8 = arith.constant dense<0.000000e+00> : vector<128x128xf32>
    %10 = tpu.matmul %5, %9, %cst_8 {dimension_numbers = #tpu.dot_dimension_numbers<[1], [1], [0], [0], [0, 0, 1, 0], [], []>} : vector<128x128xf32>, vector<128x128xf32>, vector<128x128xf32> -> vector<128x128xf32>
    %cst_9 = arith.constant 2.000000e+00 : f32
    %11 = vector.broadcast %cst_9 : f32 to vector<128x128xf32>
    %12 = arith.mulf %11, %10 : vector<128x128xf32>
    %13 = vector.broadcast %8 : vector<128x1xf32> to vector<128x128xf32>
    %14 = arith.subf %13, %12 : vector<128x128xf32>
    %c0_10 = arith.constant 0 : index
    %c0_11 = arith.constant 0 : index
    %15 = vector.load %arg5[%c0_10, %c0_11] : memref<1x128xf32, #tpu.memory_space<vmem>>, vector<1x128xf32>
    %16 = vector.broadcast %15 : vector<1x128xf32> to vector<128x128xf32>
    %17 = arith.addf %14, %16 : vector<128x128xf32>
    %18 = tpu.reduce_index %17 {axis = 1 : i32, kind = #tpu.reduction_kind<arg_min>} : vector<128x128xf32> -> vector<128xi32>
    %19 = vector.shape_cast %18 : vector<128xi32> to vector<1x128xi32>
    %c0_12 = arith.constant 0 : index
    %c0_13 = arith.constant 0 : index
    %20 = vector.load %arg6[%c0_12, %c0_13] : memref<1x128xi32, #tpu.memory_space<vmem>>, vector<1x128xi32>
    tpu.vector_store %arg6[%c0_12, %c0_13], %19 {strides = array<i32>} : memref<1x128xi32, #tpu.memory_space<vmem>>, vector<1x128xi32>,
    return
  }
  func.func @transform_0(%arg0: i32) -> (i32, i32) {
    %c0_i32 = arith.constant 0 : i32
    %c0_i32_0 = arith.constant 0 : i32
    %c0_i32_1 = arith.constant 0 : i32
    return %c0_i32, %c0_i32_0 : i32, i32
  }
  func.func @transform_1(%arg0: i32) -> (i32, i32) {
    %c0_i32 = arith.constant 0 : i32
    %c0_i32_0 = arith.constant 0 : i32
    %c0_i32_1 = arith.constant 0 : i32
    return %c0_i32, %c0_i32_0 : i32, i32
  }
  func.func @transform_2(%arg0: i32) -> (i32, i32) {
    %c0_i32 = arith.constant 0 : i32
    %c0_i32_0 = arith.constant 0 : i32
    %c0_i32_1 = arith.constant 0 : i32
    return %c0_i32, %c0_i32_0 : i32, i32
  }
  func.func @transform_3(%arg0: i32) -> (i32, i32) {
    %c0_i32 = arith.constant 0 : i32
    %c0_i32_0 = arith.constant 0 : i32
    %c0_i32_1 = arith.constant 0 : i32
    return %c0_i32, %c0_i32_0 : i32, i32
  }
  func.func @transform_4(%arg0: i32) -> (i32, i32) {
    %c0_i32 = arith.constant 0 : i32
    %c0_i32_0 = arith.constant 0 : i32
    %c0_i32_1 = arith.constant 0 : i32
    return %c0_i32, %c0_i32_0 : i32, i32
  }
  func.func @transform_5(%arg0: i32) -> (i32, i32) {
    %c0_i32 = arith.constant 0 : i32
    %c0_i32_0 = arith.constant 0 : i32
    %c0_i32_1 = arith.constant 0 : i32
    return %c0_i32, %c0_i32_0 : i32, i32
  }
}

module attributes {stable_mosaic.version = 11 : i64} {
  func.func @_gpt_fused_kernel(%arg0: i32, %arg1: memref<32x128xf32, #tpu.memory_space<vmem>>, %arg2: memref<1x1x128xf32, #tpu.memory_space<vmem>>, %arg3: memref<1x1x128xf32, #tpu.memory_space<vmem>>, %arg4: memref<1x128x384xbf16, #tpu.memory_space<vmem>>, %arg5: memref<1x1x384xf32, #tpu.memory_space<vmem>>, %arg6: memref<1x128x128xbf16, #tpu.memory_space<vmem>>, %arg7: memref<1x1x128xf32, #tpu.memory_space<vmem>>, %arg8: memref<1x1x128xf32, #tpu.memory_space<vmem>>, %arg9: memref<1x1x128xf32, #tpu.memory_space<vmem>>, %arg10: memref<1x128x512xbf16, #tpu.memory_space<vmem>>, %arg11: memref<1x1x512xf32, #tpu.memory_space<vmem>>, %arg12: memref<1x512x128xbf16, #tpu.memory_space<vmem>>, %arg13: memref<1x1x128xf32, #tpu.memory_space<vmem>>, %arg14: memref<1x128xf32, #tpu.memory_space<vmem>>, %arg15: memref<1x128xf32, #tpu.memory_space<vmem>>, %arg16: memref<128x128xbf16, #tpu.memory_space<vmem>>, %arg17: memref<32x128xf32, #tpu.memory_space<vmem>>, %arg18: memref<32x128xf32, #tpu.memory_space<vmem>>) attributes {dimension_semantics = [#tpu.dimension_semantics<arbitrary>], iteration_bounds = array<i64: 2>, scalar_prefetch = 0 : i64, scratch_operands = 1 : i64, tpu.core_type = #tpu.core_type<tc>, window_params = [{pipeline_mode = #tpu.pipeline_mode<synchronous>, transform_indices = @transform_0, window_bounds = array<i64: 32, 128>}, {transform_indices = @transform_1, window_bounds = array<i64: 1, 1, 128>}, {transform_indices = @transform_2, window_bounds = array<i64: 1, 1, 128>}, {transform_indices = @transform_3, window_bounds = array<i64: 1, 128, 384>}, {transform_indices = @transform_4, window_bounds = array<i64: 1, 1, 384>}, {transform_indices = @transform_5, window_bounds = array<i64: 1, 128, 128>}, {transform_indices = @transform_6, window_bounds = array<i64: 1, 1, 128>}, {transform_indices = @transform_7, window_bounds = array<i64: 1, 1, 128>}, {transform_indices = @transform_8, window_bounds = array<i64: 1, 1, 128>}, {transform_indices = @transform_9, window_bounds = array<i64: 1, 128, 512>}, {transform_indices = @transform_10, window_bounds = array<i64: 1, 1, 512>}, {transform_indices = @transform_11, window_bounds = array<i64: 1, 512, 128>}, {transform_indices = @transform_12, window_bounds = array<i64: 1, 1, 128>}, {pipeline_mode = #tpu.pipeline_mode<synchronous>, transform_indices = @transform_13, window_bounds = array<i64: 1, 128>}, {pipeline_mode = #tpu.pipeline_mode<synchronous>, transform_indices = @transform_14, window_bounds = array<i64: 1, 128>}, {pipeline_mode = #tpu.pipeline_mode<synchronous>, transform_indices = @transform_15, window_bounds = array<i64: 128, 128>}, {pipeline_mode = #tpu.pipeline_mode<synchronous>, transform_indices = @transform_16, window_bounds = array<i64: 32, 128>}]} {
    %c0_i32 = arith.constant 0 : i32
    %0 = arith.cmpi eq, %arg0, %c0_i32 : i32
    %1 = arith.extui %0 : i1 to i32
    %c0_i32_0 = arith.constant 0 : i32
    %2 = arith.cmpi ne, %1, %c0_i32_0 : i32
    scf.if %2 {
      %c0_80 = arith.constant 0 : index
      %c0_81 = arith.constant 0 : index
      %208 = vector.load %arg1[%c0_80, %c0_81] : memref<32x128xf32, #tpu.memory_space<vmem>>, vector<32x128xf32>
      %c0_82 = arith.constant 0 : index
      %c0_83 = arith.constant 0 : index
      %209 = vector.load %arg18[%c0_82, %c0_83] : memref<32x128xf32, #tpu.memory_space<vmem>>, vector<32x128xf32>
      tpu.vector_store %arg18[%c0_82, %c0_83], %208 {strides = array<i32>} : memref<32x128xf32, #tpu.memory_space<vmem>>, vector<32x128xf32>,
    } else {
    }
    %c0 = arith.constant 0 : index
    %c0_1 = arith.constant 0 : index
    %3 = vector.load %arg18[%c0, %c0_1] : memref<32x128xf32, #tpu.memory_space<vmem>>, vector<32x128xf32>
    %c0_2 = arith.constant 0 : index
    %c0_3 = arith.constant 0 : index
    %c0_4 = arith.constant 0 : index
    %4 = vector.load %arg2[%c0_2, %c0_3, %c0_4] : memref<1x1x128xf32, #tpu.memory_space<vmem>>, vector<1x1x128xf32>
    %5 = vector.shape_cast %4 : vector<1x1x128xf32> to vector<1x128xf32>
    %c0_5 = arith.constant 0 : index
    %c0_6 = arith.constant 0 : index
    %c0_7 = arith.constant 0 : index
    %6 = vector.load %arg3[%c0_5, %c0_6, %c0_7] : memref<1x1x128xf32, #tpu.memory_space<vmem>>, vector<1x1x128xf32>
    %7 = vector.shape_cast %6 : vector<1x1x128xf32> to vector<1x128xf32>
    %cst = arith.constant dense<0.000000e+00> : vector<32xf32>
    %8 = vector.multi_reduction <add>, %3, %cst [1] : vector<32x128xf32> to vector<32xf32>
    %9 = vector.shape_cast %8 : vector<32xf32> to vector<32x1xf32>
    %cst_8 = arith.constant 1.280000e+02 : f32
    %10 = vector.broadcast %cst_8 : f32 to vector<32x1xf32>
    %11 = arith.divf %9, %10 : vector<32x1xf32>
    %12 = vector.broadcast %11 : vector<32x1xf32> to vector<32x128xf32>
    %13 = arith.subf %3, %12 : vector<32x128xf32>
    %14 = vector.broadcast %11 : vector<32x1xf32> to vector<32x128xf32>
    %15 = arith.subf %3, %14 : vector<32x128xf32>
    %16 = arith.mulf %13, %15 : vector<32x128xf32>
    %cst_9 = arith.constant dense<0.000000e+00> : vector<32xf32>
    %17 = vector.multi_reduction <add>, %16, %cst_9 [1] : vector<32x128xf32> to vector<32xf32>
    %18 = vector.shape_cast %17 : vector<32xf32> to vector<32x1xf32>
    %cst_10 = arith.constant 1.280000e+02 : f32
    %19 = vector.broadcast %cst_10 : f32 to vector<32x1xf32>
    %20 = arith.divf %18, %19 : vector<32x1xf32>
    %21 = vector.broadcast %11 : vector<32x1xf32> to vector<32x128xf32>
    %22 = arith.subf %3, %21 : vector<32x128xf32>
    %cst_11 = arith.constant 9.99999974E-6 : f32
    %23 = vector.broadcast %cst_11 : f32 to vector<32x1xf32>
    %24 = arith.addf %20, %23 : vector<32x1xf32>
    %25 = math.rsqrt %24 : vector<32x1xf32>
    %26 = vector.broadcast %25 : vector<32x1xf32> to vector<32x128xf32>
    %27 = arith.mulf %22, %26 : vector<32x128xf32>
    %28 = vector.broadcast %5 : vector<1x128xf32> to vector<32x128xf32>
    %29 = arith.mulf %27, %28 : vector<32x128xf32>
    %30 = vector.broadcast %7 : vector<1x128xf32> to vector<32x128xf32>
    %31 = arith.addf %29, %30 : vector<32x128xf32>
    %32 = arith.truncf %31 : vector<32x128xf32> to vector<32x128xbf16>
    %c0_12 = arith.constant 0 : index
    %c0_13 = arith.constant 0 : index
    %c0_14 = arith.constant 0 : index
    %33 = vector.load %arg4[%c0_12, %c0_13, %c0_14] : memref<1x128x384xbf16, #tpu.memory_space<vmem>>, vector<1x128x384xbf16>
    %34 = vector.shape_cast %33 : vector<1x128x384xbf16> to vector<128x384xbf16>
    %cst_15 = arith.constant dense<0.000000e+00> : vector<32x384xf32>
    %35 = tpu.matmul %32, %34, %cst_15 {dimension_numbers = #tpu.dot_dimension_numbers<[1], [0], [0], [1], [0, 0, 1, 1], [], []>} : vector<32x128xbf16>, vector<128x384xbf16>, vector<32x384xf32> -> vector<32x384xf32>
    %c0_16 = arith.constant 0 : index
    %c0_17 = arith.constant 0 : index
    %c0_18 = arith.constant 0 : index
    %36 = vector.load %arg5[%c0_16, %c0_17, %c0_18] : memref<1x1x384xf32, #tpu.memory_space<vmem>>, vector<1x1x384xf32>
    %37 = vector.shape_cast %36 : vector<1x1x384xf32> to vector<1x384xf32>
    %38 = vector.broadcast %37 : vector<1x384xf32> to vector<32x384xf32>
    %39 = arith.addf %35, %38 : vector<32x384xf32>
    %40 = tpu.iota {dimensions = array<i32: 0>} : vector<16x16xi32>
    %41 = tpu.iota {dimensions = array<i32: 1>} : vector<16x16xi32>
    %42 = arith.cmpi sle, %41, %40 : vector<16x16xi32>
    %cst_19 = arith.constant 0.000000e+00 : f32
    %cst_20 = arith.constant -1.000000e+30 : f32
    %43 = vector.broadcast %cst_19 : f32 to vector<16x16xf32>
    %44 = vector.broadcast %cst_20 : f32 to vector<16x16xf32>
    %45 = arith.select %42, %43, %44 : vector<16x16xi1>, vector<16x16xf32>
    %46 = vector.extract_strided_slice %39 {offsets = [0, 0], sizes = [16, 64], strides = [1, 1]} : vector<32x384xf32> to vector<16x64xf32>
    %47 = vector.extract_strided_slice %39 {offsets = [0, 128], sizes = [16, 64], strides = [1, 1]} : vector<32x384xf32> to vector<16x64xf32>
    %48 = vector.extract_strided_slice %39 {offsets = [0, 256], sizes = [16, 64], strides = [1, 1]} : vector<32x384xf32> to vector<16x64xf32>
    %49 = arith.truncf %46 : vector<16x64xf32> to vector<16x64xbf16>
    %50 = arith.truncf %47 : vector<16x64xf32> to vector<16x64xbf16>
    %cst_21 = arith.constant dense<0.000000e+00> : vector<16x16xf32>
    %51 = tpu.matmul %49, %50, %cst_21 {dimension_numbers = #tpu.dot_dimension_numbers<[1], [1], [0], [0], [0, 0, 1, 0], [], []>} : vector<16x64xbf16>, vector<16x64xbf16>, vector<16x16xf32> -> vector<16x16xf32>
    %cst_22 = arith.constant 1.250000e-01 : f32
    %52 = vector.broadcast %cst_22 : f32 to vector<16x16xf32>
    %53 = arith.mulf %51, %52 : vector<16x16xf32>
    %54 = arith.addf %53, %45 : vector<16x16xf32>
    %cst_23 = arith.constant dense<0xFF800000> : vector<16xf32>
    %55 = vector.multi_reduction <maximumf>, %54, %cst_23 [1] : vector<16x16xf32> to vector<16xf32>
    %56 = vector.shape_cast %55 : vector<16xf32> to vector<16x1xf32>
    %57 = vector.broadcast %56 : vector<16x1xf32> to vector<16x16xf32>
    %58 = arith.subf %54, %57 : vector<16x16xf32>
    %59 = math.exp %58 : vector<16x16xf32>
    %cst_24 = arith.constant dense<0.000000e+00> : vector<16xf32>
    %60 = vector.multi_reduction <add>, %59, %cst_24 [1] : vector<16x16xf32> to vector<16xf32>
    %61 = vector.shape_cast %60 : vector<16xf32> to vector<16x1xf32>
    %62 = arith.truncf %59 : vector<16x16xf32> to vector<16x16xbf16>
    %63 = arith.truncf %48 : vector<16x64xf32> to vector<16x64xbf16>
    %cst_25 = arith.constant dense<0.000000e+00> : vector<16x64xf32>
    %64 = tpu.matmul %62, %63, %cst_25 {dimension_numbers = #tpu.dot_dimension_numbers<[1], [0], [0], [1], [0, 0, 1, 1], [], []>} : vector<16x16xbf16>, vector<16x64xbf16>, vector<16x64xf32> -> vector<16x64xf32>
    %65 = tpu.reciprocal %61 {approx = true} : vector<16x1xf32> -> vector<16x1xf32>
    %66 = vector.broadcast %65 : vector<16x1xf32> to vector<16x64xf32>
    %67 = arith.mulf %64, %66 : vector<16x64xf32>
    %68 = vector.extract_strided_slice %39 {offsets = [0, 64], sizes = [16, 64], strides = [1, 1]} : vector<32x384xf32> to vector<16x64xf32>
    %69 = vector.extract_strided_slice %39 {offsets = [0, 192], sizes = [16, 64], strides = [1, 1]} : vector<32x384xf32> to vector<16x64xf32>
    %70 = vector.extract_strided_slice %39 {offsets = [0, 320], sizes = [16, 64], strides = [1, 1]} : vector<32x384xf32> to vector<16x64xf32>
    %71 = arith.truncf %68 : vector<16x64xf32> to vector<16x64xbf16>
    %72 = arith.truncf %69 : vector<16x64xf32> to vector<16x64xbf16>
    %cst_26 = arith.constant dense<0.000000e+00> : vector<16x16xf32>
    %73 = tpu.matmul %71, %72, %cst_26 {dimension_numbers = #tpu.dot_dimension_numbers<[1], [1], [0], [0], [0, 0, 1, 0], [], []>} : vector<16x64xbf16>, vector<16x64xbf16>, vector<16x16xf32> -> vector<16x16xf32>
    %cst_27 = arith.constant 1.250000e-01 : f32
    %74 = vector.broadcast %cst_27 : f32 to vector<16x16xf32>
    %75 = arith.mulf %73, %74 : vector<16x16xf32>
    %76 = arith.addf %75, %45 : vector<16x16xf32>
    %cst_28 = arith.constant dense<0xFF800000> : vector<16xf32>
    %77 = vector.multi_reduction <maximumf>, %76, %cst_28 [1] : vector<16x16xf32> to vector<16xf32>
    %78 = vector.shape_cast %77 : vector<16xf32> to vector<16x1xf32>
    %79 = vector.broadcast %78 : vector<16x1xf32> to vector<16x16xf32>
    %80 = arith.subf %76, %79 : vector<16x16xf32>
    %81 = math.exp %80 : vector<16x16xf32>
    %cst_29 = arith.constant dense<0.000000e+00> : vector<16xf32>
    %82 = vector.multi_reduction <add>, %81, %cst_29 [1] : vector<16x16xf32> to vector<16xf32>
    %83 = vector.shape_cast %82 : vector<16xf32> to vector<16x1xf32>
    %84 = arith.truncf %81 : vector<16x16xf32> to vector<16x16xbf16>
    %85 = arith.truncf %70 : vector<16x64xf32> to vector<16x64xbf16>
    %cst_30 = arith.constant dense<0.000000e+00> : vector<16x64xf32>
    %86 = tpu.matmul %84, %85, %cst_30 {dimension_numbers = #tpu.dot_dimension_numbers<[1], [0], [0], [1], [0, 0, 1, 1], [], []>} : vector<16x16xbf16>, vector<16x64xbf16>, vector<16x64xf32> -> vector<16x64xf32>
    %87 = tpu.reciprocal %83 {approx = true} : vector<16x1xf32> -> vector<16x1xf32>
    %88 = vector.broadcast %87 : vector<16x1xf32> to vector<16x64xf32>
    %89 = arith.mulf %86, %88 : vector<16x64xf32>
    %90 = tpu.concatenate %67, %89 in 1 : vector<16x64xf32>, vector<16x64xf32> -> vector<16x128xf32>
    %91 = vector.extract_strided_slice %39 {offsets = [16, 0], sizes = [16, 64], strides = [1, 1]} : vector<32x384xf32> to vector<16x64xf32>
    %92 = vector.extract_strided_slice %39 {offsets = [16, 128], sizes = [16, 64], strides = [1, 1]} : vector<32x384xf32> to vector<16x64xf32>
    %93 = vector.extract_strided_slice %39 {offsets = [16, 256], sizes = [16, 64], strides = [1, 1]} : vector<32x384xf32> to vector<16x64xf32>
    %94 = arith.truncf %91 : vector<16x64xf32> to vector<16x64xbf16>
    %95 = arith.truncf %92 : vector<16x64xf32> to vector<16x64xbf16>
    %cst_31 = arith.constant dense<0.000000e+00> : vector<16x16xf32>
    %96 = tpu.matmul %94, %95, %cst_31 {dimension_numbers = #tpu.dot_dimension_numbers<[1], [1], [0], [0], [0, 0, 1, 0], [], []>} : vector<16x64xbf16>, vector<16x64xbf16>, vector<16x16xf32> -> vector<16x16xf32>
    %cst_32 = arith.constant 1.250000e-01 : f32
    %97 = vector.broadcast %cst_32 : f32 to vector<16x16xf32>
    %98 = arith.mulf %96, %97 : vector<16x16xf32>
    %99 = arith.addf %98, %45 : vector<16x16xf32>
    %cst_33 = arith.constant dense<0xFF800000> : vector<16xf32>
    %100 = vector.multi_reduction <maximumf>, %99, %cst_33 [1] : vector<16x16xf32> to vector<16xf32>
    %101 = vector.shape_cast %100 : vector<16xf32> to vector<16x1xf32>
    %102 = vector.broadcast %101 : vector<16x1xf32> to vector<16x16xf32>
    %103 = arith.subf %99, %102 : vector<16x16xf32>
    %104 = math.exp %103 : vector<16x16xf32>
    %cst_34 = arith.constant dense<0.000000e+00> : vector<16xf32>
    %105 = vector.multi_reduction <add>, %104, %cst_34 [1] : vector<16x16xf32> to vector<16xf32>
    %106 = vector.shape_cast %105 : vector<16xf32> to vector<16x1xf32>
    %107 = arith.truncf %104 : vector<16x16xf32> to vector<16x16xbf16>
    %108 = arith.truncf %93 : vector<16x64xf32> to vector<16x64xbf16>
    %cst_35 = arith.constant dense<0.000000e+00> : vector<16x64xf32>
    %109 = tpu.matmul %107, %108, %cst_35 {dimension_numbers = #tpu.dot_dimension_numbers<[1], [0], [0], [1], [0, 0, 1, 1], [], []>} : vector<16x16xbf16>, vector<16x64xbf16>, vector<16x64xf32> -> vector<16x64xf32>
    %110 = tpu.reciprocal %106 {approx = true} : vector<16x1xf32> -> vector<16x1xf32>
    %111 = vector.broadcast %110 : vector<16x1xf32> to vector<16x64xf32>
    %112 = arith.mulf %109, %111 : vector<16x64xf32>
    %113 = vector.extract_strided_slice %39 {offsets = [16, 64], sizes = [16, 64], strides = [1, 1]} : vector<32x384xf32> to vector<16x64xf32>
    %114 = vector.extract_strided_slice %39 {offsets = [16, 192], sizes = [16, 64], strides = [1, 1]} : vector<32x384xf32> to vector<16x64xf32>
    %115 = vector.extract_strided_slice %39 {offsets = [16, 320], sizes = [16, 64], strides = [1, 1]} : vector<32x384xf32> to vector<16x64xf32>
    %116 = arith.truncf %113 : vector<16x64xf32> to vector<16x64xbf16>
    %117 = arith.truncf %114 : vector<16x64xf32> to vector<16x64xbf16>
    %cst_36 = arith.constant dense<0.000000e+00> : vector<16x16xf32>
    %118 = tpu.matmul %116, %117, %cst_36 {dimension_numbers = #tpu.dot_dimension_numbers<[1], [1], [0], [0], [0, 0, 1, 0], [], []>} : vector<16x64xbf16>, vector<16x64xbf16>, vector<16x16xf32> -> vector<16x16xf32>
    %cst_37 = arith.constant 1.250000e-01 : f32
    %119 = vector.broadcast %cst_37 : f32 to vector<16x16xf32>
    %120 = arith.mulf %118, %119 : vector<16x16xf32>
    %121 = arith.addf %120, %45 : vector<16x16xf32>
    %cst_38 = arith.constant dense<0xFF800000> : vector<16xf32>
    %122 = vector.multi_reduction <maximumf>, %121, %cst_38 [1] : vector<16x16xf32> to vector<16xf32>
    %123 = vector.shape_cast %122 : vector<16xf32> to vector<16x1xf32>
    %124 = vector.broadcast %123 : vector<16x1xf32> to vector<16x16xf32>
    %125 = arith.subf %121, %124 : vector<16x16xf32>
    %126 = math.exp %125 : vector<16x16xf32>
    %cst_39 = arith.constant dense<0.000000e+00> : vector<16xf32>
    %127 = vector.multi_reduction <add>, %126, %cst_39 [1] : vector<16x16xf32> to vector<16xf32>
    %128 = vector.shape_cast %127 : vector<16xf32> to vector<16x1xf32>
    %129 = arith.truncf %126 : vector<16x16xf32> to vector<16x16xbf16>
    %130 = arith.truncf %115 : vector<16x64xf32> to vector<16x64xbf16>
    %cst_40 = arith.constant dense<0.000000e+00> : vector<16x64xf32>
    %131 = tpu.matmul %129, %130, %cst_40 {dimension_numbers = #tpu.dot_dimension_numbers<[1], [0], [0], [1], [0, 0, 1, 1], [], []>} : vector<16x16xbf16>, vector<16x64xbf16>, vector<16x64xf32> -> vector<16x64xf32>
    %132 = tpu.reciprocal %128 {approx = true} : vector<16x1xf32> -> vector<16x1xf32>
    %133 = vector.broadcast %132 : vector<16x1xf32> to vector<16x64xf32>
    %134 = arith.mulf %131, %133 : vector<16x64xf32>
    %135 = tpu.concatenate %112, %134 in 1 : vector<16x64xf32>, vector<16x64xf32> -> vector<16x128xf32>
    %136 = tpu.concatenate %90, %135 in 0 : vector<16x128xf32>, vector<16x128xf32> -> vector<32x128xf32>
    %137 = arith.truncf %136 : vector<32x128xf32> to vector<32x128xbf16>
    %c0_41 = arith.constant 0 : index
    %c0_42 = arith.constant 0 : index
    %c0_43 = arith.constant 0 : index
    %138 = vector.load %arg6[%c0_41, %c0_42, %c0_43] : memref<1x128x128xbf16, #tpu.memory_space<vmem>>, vector<1x128x128xbf16>
    %139 = vector.shape_cast %138 : vector<1x128x128xbf16> to vector<128x128xbf16>
    %cst_44 = arith.constant dense<0.000000e+00> : vector<32x128xf32>
    %140 = tpu.matmul %137, %139, %cst_44 {dimension_numbers = #tpu.dot_dimension_numbers<[1], [0], [0], [1], [0, 0, 1, 1], [], []>} : vector<32x128xbf16>, vector<128x128xbf16>, vector<32x128xf32> -> vector<32x128xf32>
    %141 = arith.addf %3, %140 : vector<32x128xf32>
    %c0_45 = arith.constant 0 : index
    %c0_46 = arith.constant 0 : index
    %c0_47 = arith.constant 0 : index
    %142 = vector.load %arg7[%c0_45, %c0_46, %c0_47] : memref<1x1x128xf32, #tpu.memory_space<vmem>>, vector<1x1x128xf32>
    %143 = vector.shape_cast %142 : vector<1x1x128xf32> to vector<1x128xf32>
    %144 = vector.broadcast %143 : vector<1x128xf32> to vector<32x128xf32>
    %145 = arith.addf %141, %144 : vector<32x128xf32>
    %c0_48 = arith.constant 0 : index
    %c0_49 = arith.constant 0 : index
    %c0_50 = arith.constant 0 : index
    %146 = vector.load %arg8[%c0_48, %c0_49, %c0_50] : memref<1x1x128xf32, #tpu.memory_space<vmem>>, vector<1x1x128xf32>
    %147 = vector.shape_cast %146 : vector<1x1x128xf32> to vector<1x128xf32>
    %c0_51 = arith.constant 0 : index
    %c0_52 = arith.constant 0 : index
    %c0_53 = arith.constant 0 : index
    %148 = vector.load %arg9[%c0_51, %c0_52, %c0_53] : memref<1x1x128xf32, #tpu.memory_space<vmem>>, vector<1x1x128xf32>
    %149 = vector.shape_cast %148 : vector<1x1x128xf32> to vector<1x128xf32>
    %cst_54 = arith.constant dense<0.000000e+00> : vector<32xf32>
    %150 = vector.multi_reduction <add>, %145, %cst_54 [1] : vector<32x128xf32> to vector<32xf32>
    %151 = vector.shape_cast %150 : vector<32xf32> to vector<32x1xf32>
    %cst_55 = arith.constant 1.280000e+02 : f32
    %152 = vector.broadcast %cst_55 : f32 to vector<32x1xf32>
    %153 = arith.divf %151, %152 : vector<32x1xf32>
    %154 = vector.broadcast %153 : vector<32x1xf32> to vector<32x128xf32>
    %155 = arith.subf %145, %154 : vector<32x128xf32>
    %156 = vector.broadcast %153 : vector<32x1xf32> to vector<32x128xf32>
    %157 = arith.subf %145, %156 : vector<32x128xf32>
    %158 = arith.mulf %155, %157 : vector<32x128xf32>
    %cst_56 = arith.constant dense<0.000000e+00> : vector<32xf32>
    %159 = vector.multi_reduction <add>, %158, %cst_56 [1] : vector<32x128xf32> to vector<32xf32>
    %160 = vector.shape_cast %159 : vector<32xf32> to vector<32x1xf32>
    %cst_57 = arith.constant 1.280000e+02 : f32
    %161 = vector.broadcast %cst_57 : f32 to vector<32x1xf32>
    %162 = arith.divf %160, %161 : vector<32x1xf32>
    %163 = vector.broadcast %153 : vector<32x1xf32> to vector<32x128xf32>
    %164 = arith.subf %145, %163 : vector<32x128xf32>
    %cst_58 = arith.constant 9.99999974E-6 : f32
    %165 = vector.broadcast %cst_58 : f32 to vector<32x1xf32>
    %166 = arith.addf %162, %165 : vector<32x1xf32>
    %167 = math.rsqrt %166 : vector<32x1xf32>
    %168 = vector.broadcast %167 : vector<32x1xf32> to vector<32x128xf32>
    %169 = arith.mulf %164, %168 : vector<32x128xf32>
    %170 = vector.broadcast %147 : vector<1x128xf32> to vector<32x128xf32>
    %171 = arith.mulf %169, %170 : vector<32x128xf32>
    %172 = vector.broadcast %149 : vector<1x128xf32> to vector<32x128xf32>
    %173 = arith.addf %171, %172 : vector<32x128xf32>
    %174 = arith.truncf %173 : vector<32x128xf32> to vector<32x128xbf16>
    %c0_59 = arith.constant 0 : index
    %c0_60 = arith.constant 0 : index
    %c0_61 = arith.constant 0 : index
    %175 = vector.load %arg10[%c0_59, %c0_60, %c0_61] : memref<1x128x512xbf16, #tpu.memory_space<vmem>>, vector<1x128x512xbf16>
    %176 = vector.shape_cast %175 : vector<1x128x512xbf16> to vector<128x512xbf16>
    %cst_62 = arith.constant dense<0.000000e+00> : vector<32x512xf32>
    %177 = tpu.matmul %174, %176, %cst_62 {dimension_numbers = #tpu.dot_dimension_numbers<[1], [0], [0], [1], [0, 0, 1, 1], [], []>} : vector<32x128xbf16>, vector<128x512xbf16>, vector<32x512xf32> -> vector<32x512xf32>
    %c0_63 = arith.constant 0 : index
    %c0_64 = arith.constant 0 : index
    %c0_65 = arith.constant 0 : index
    %178 = vector.load %arg11[%c0_63, %c0_64, %c0_65] : memref<1x1x512xf32, #tpu.memory_space<vmem>>, vector<1x1x512xf32>
    %179 = vector.shape_cast %178 : vector<1x1x512xf32> to vector<1x512xf32>
    %180 = vector.broadcast %179 : vector<1x512xf32> to vector<32x512xf32>
    %181 = arith.addf %177, %180 : vector<32x512xf32>
    %182 = arith.mulf %181, %181 : vector<32x512xf32>
    %183 = arith.mulf %181, %182 : vector<32x512xf32>
    %cst_66 = arith.constant 4.471500e-02 : f32
    %184 = vector.broadcast %cst_66 : f32 to vector<32x512xf32>
    %185 = arith.mulf %184, %183 : vector<32x512xf32>
    %186 = arith.addf %181, %185 : vector<32x512xf32>
    %cst_67 = arith.constant 0.797884583 : f32
    %187 = vector.broadcast %cst_67 : f32 to vector<32x512xf32>
    %188 = arith.mulf %187, %186 : vector<32x512xf32>
    %189 = math.tanh %188 : vector<32x512xf32>
    %cst_68 = arith.constant 1.000000e+00 : f32
    %190 = vector.broadcast %cst_68 : f32 to vector<32x512xf32>
    %191 = arith.addf %190, %189 : vector<32x512xf32>
    %cst_69 = arith.constant 5.000000e-01 : f32
    %192 = vector.broadcast %cst_69 : f32 to vector<32x512xf32>
    %193 = arith.mulf %192, %191 : vector<32x512xf32>
    %194 = arith.mulf %181, %193 : vector<32x512xf32>
    %195 = arith.truncf %194 : vector<32x512xf32> to vector<32x512xbf16>
    %c0_70 = arith.constant 0 : index
    %c0_71 = arith.constant 0 : index
    %c0_72 = arith.constant 0 : index
    %196 = vector.load %arg12[%c0_70, %c0_71, %c0_72] : memref<1x512x128xbf16, #tpu.memory_space<vmem>>, vector<1x512x128xbf16>
    %197 = vector.shape_cast %196 : vector<1x512x128xbf16> to vector<512x128xbf16>
    %cst_73 = arith.constant dense<0.000000e+00> : vector<32x128xf32>
    %198 = tpu.matmul %195, %197, %cst_73 {dimension_numbers = #tpu.dot_dimension_numbers<[1], [0], [0], [1], [0, 0, 1, 1], [], []>} : vector<32x512xbf16>, vector<512x128xbf16>, vector<32x128xf32> -> vector<32x128xf32>
    %c0_74 = arith.constant 0 : index
    %c0_75 = arith.constant 0 : index
    %c0_76 = arith.constant 0 : index
    %199 = vector.load %arg13[%c0_74, %c0_75, %c0_76] : memref<1x1x128xf32, #tpu.memory_space<vmem>>, vector<1x1x128xf32>
    %200 = vector.shape_cast %199 : vector<1x1x128xf32> to vector<1x128xf32>
    %201 = vector.broadcast %200 : vector<1x128xf32> to vector<32x128xf32>
    %202 = arith.addf %198, %201 : vector<32x128xf32>
    %203 = arith.addf %145, %202 : vector<32x128xf32>
    %c0_77 = arith.constant 0 : index
    %c0_78 = arith.constant 0 : index
    %204 = vector.load %arg18[%c0_77, %c0_78] : memref<32x128xf32, #tpu.memory_space<vmem>>, vector<32x128xf32>
    tpu.vector_store %arg18[%c0_77, %c0_78], %203 {strides = array<i32>} : memref<32x128xf32, #tpu.memory_space<vmem>>, vector<32x128xf32>,
    %c1_i32 = arith.constant 1 : i32
    %205 = arith.cmpi eq, %arg0, %c1_i32 : i32
    %206 = arith.extui %205 : i1 to i32
    %c0_i32_79 = arith.constant 0 : i32
    %207 = arith.cmpi ne, %206, %c0_i32_79 : i32
    scf.if %207 {
      %c0_80 = arith.constant 0 : index
      %c0_81 = arith.constant 0 : index
      %208 = vector.load %arg14[%c0_80, %c0_81] : memref<1x128xf32, #tpu.memory_space<vmem>>, vector<1x128xf32>
      %c0_82 = arith.constant 0 : index
      %c0_83 = arith.constant 0 : index
      %209 = vector.load %arg15[%c0_82, %c0_83] : memref<1x128xf32, #tpu.memory_space<vmem>>, vector<1x128xf32>
      %cst_84 = arith.constant dense<0.000000e+00> : vector<32xf32>
      %210 = vector.multi_reduction <add>, %203, %cst_84 [1] : vector<32x128xf32> to vector<32xf32>
      %211 = vector.shape_cast %210 : vector<32xf32> to vector<32x1xf32>
      %cst_85 = arith.constant 1.280000e+02 : f32
      %212 = vector.broadcast %cst_85 : f32 to vector<32x1xf32>
      %213 = arith.divf %211, %212 : vector<32x1xf32>
      %214 = vector.broadcast %213 : vector<32x1xf32> to vector<32x128xf32>
      %215 = arith.subf %203, %214 : vector<32x128xf32>
      %216 = vector.broadcast %213 : vector<32x1xf32> to vector<32x128xf32>
      %217 = arith.subf %203, %216 : vector<32x128xf32>
      %218 = arith.mulf %215, %217 : vector<32x128xf32>
      %cst_86 = arith.constant dense<0.000000e+00> : vector<32xf32>
      %219 = vector.multi_reduction <add>, %218, %cst_86 [1] : vector<32x128xf32> to vector<32xf32>
      %220 = vector.shape_cast %219 : vector<32xf32> to vector<32x1xf32>
      %cst_87 = arith.constant 1.280000e+02 : f32
      %221 = vector.broadcast %cst_87 : f32 to vector<32x1xf32>
      %222 = arith.divf %220, %221 : vector<32x1xf32>
      %223 = vector.broadcast %213 : vector<32x1xf32> to vector<32x128xf32>
      %224 = arith.subf %203, %223 : vector<32x128xf32>
      %cst_88 = arith.constant 9.99999974E-6 : f32
      %225 = vector.broadcast %cst_88 : f32 to vector<32x1xf32>
      %226 = arith.addf %222, %225 : vector<32x1xf32>
      %227 = math.rsqrt %226 : vector<32x1xf32>
      %228 = vector.broadcast %227 : vector<32x1xf32> to vector<32x128xf32>
      %229 = arith.mulf %224, %228 : vector<32x128xf32>
      %230 = vector.broadcast %208 : vector<1x128xf32> to vector<32x128xf32>
      %231 = arith.mulf %229, %230 : vector<32x128xf32>
      %232 = vector.broadcast %209 : vector<1x128xf32> to vector<32x128xf32>
      %233 = arith.addf %231, %232 : vector<32x128xf32>
      %234 = arith.truncf %233 : vector<32x128xf32> to vector<32x128xbf16>
      %c0_89 = arith.constant 0 : index
      %c0_90 = arith.constant 0 : index
      %235 = vector.load %arg16[%c0_89, %c0_90] : memref<128x128xbf16, #tpu.memory_space<vmem>>, vector<128x128xbf16>
      %cst_91 = arith.constant dense<0.000000e+00> : vector<32x128xf32>
      %236 = tpu.matmul %234, %235, %cst_91 {dimension_numbers = #tpu.dot_dimension_numbers<[1], [0], [0], [1], [0, 0, 1, 1], [], []>} : vector<32x128xbf16>, vector<128x128xbf16>, vector<32x128xf32> -> vector<32x128xf32>
      %c0_92 = arith.constant 0 : index
      %c0_93 = arith.constant 0 : index
      %237 = vector.load %arg17[%c0_92, %c0_93] : memref<32x128xf32, #tpu.memory_space<vmem>>, vector<32x128xf32>
      tpu.vector_store %arg17[%c0_92, %c0_93], %236 {strides = array<i32>} : memref<32x128xf32, #tpu.memory_space<vmem>>, vector<32x128xf32>,
    } else {
    }
    return
  }
  func.func @transform_0(%arg0: i32) -> (i32, i32) {
    %c0_i32 = arith.constant 0 : i32
    %c0_i32_0 = arith.constant 0 : i32
    %c0_i32_1 = arith.constant 0 : i32
    return %c0_i32, %c0_i32_0 : i32, i32
  }
  func.func @transform_1(%arg0: i32) -> (i32, i32, i32) {
    %c0_i32 = arith.constant 0 : i32
    %c0_i32_0 = arith.constant 0 : i32
    %c0_i32_1 = arith.constant 0 : i32
    return %arg0, %c0_i32, %c0_i32_0 : i32, i32, i32
  }
  func.func @transform_2(%arg0: i32) -> (i32, i32, i32) {
    %c0_i32 = arith.constant 0 : i32
    %c0_i32_0 = arith.constant 0 : i32
    %c0_i32_1 = arith.constant 0 : i32
    return %arg0, %c0_i32, %c0_i32_0 : i32, i32, i32
  }
  func.func @transform_3(%arg0: i32) -> (i32, i32, i32) {
    %c0_i32 = arith.constant 0 : i32
    %c0_i32_0 = arith.constant 0 : i32
    %c0_i32_1 = arith.constant 0 : i32
    return %arg0, %c0_i32, %c0_i32_0 : i32, i32, i32
  }
  func.func @transform_4(%arg0: i32) -> (i32, i32, i32) {
    %c0_i32 = arith.constant 0 : i32
    %c0_i32_0 = arith.constant 0 : i32
    %c0_i32_1 = arith.constant 0 : i32
    return %arg0, %c0_i32, %c0_i32_0 : i32, i32, i32
  }
  func.func @transform_5(%arg0: i32) -> (i32, i32, i32) {
    %c0_i32 = arith.constant 0 : i32
    %c0_i32_0 = arith.constant 0 : i32
    %c0_i32_1 = arith.constant 0 : i32
    return %arg0, %c0_i32, %c0_i32_0 : i32, i32, i32
  }
  func.func @transform_6(%arg0: i32) -> (i32, i32, i32) {
    %c0_i32 = arith.constant 0 : i32
    %c0_i32_0 = arith.constant 0 : i32
    %c0_i32_1 = arith.constant 0 : i32
    return %arg0, %c0_i32, %c0_i32_0 : i32, i32, i32
  }
  func.func @transform_7(%arg0: i32) -> (i32, i32, i32) {
    %c0_i32 = arith.constant 0 : i32
    %c0_i32_0 = arith.constant 0 : i32
    %c0_i32_1 = arith.constant 0 : i32
    return %arg0, %c0_i32, %c0_i32_0 : i32, i32, i32
  }
  func.func @transform_8(%arg0: i32) -> (i32, i32, i32) {
    %c0_i32 = arith.constant 0 : i32
    %c0_i32_0 = arith.constant 0 : i32
    %c0_i32_1 = arith.constant 0 : i32
    return %arg0, %c0_i32, %c0_i32_0 : i32, i32, i32
  }
  func.func @transform_9(%arg0: i32) -> (i32, i32, i32) {
    %c0_i32 = arith.constant 0 : i32
    %c0_i32_0 = arith.constant 0 : i32
    %c0_i32_1 = arith.constant 0 : i32
    return %arg0, %c0_i32, %c0_i32_0 : i32, i32, i32
  }
  func.func @transform_10(%arg0: i32) -> (i32, i32, i32) {
    %c0_i32 = arith.constant 0 : i32
    %c0_i32_0 = arith.constant 0 : i32
    %c0_i32_1 = arith.constant 0 : i32
    return %arg0, %c0_i32, %c0_i32_0 : i32, i32, i32
  }
  func.func @transform_11(%arg0: i32) -> (i32, i32, i32) {
    %c0_i32 = arith.constant 0 : i32
    %c0_i32_0 = arith.constant 0 : i32
    %c0_i32_1 = arith.constant 0 : i32
    return %arg0, %c0_i32, %c0_i32_0 : i32, i32, i32
  }
  func.func @transform_12(%arg0: i32) -> (i32, i32, i32) {
    %c0_i32 = arith.constant 0 : i32
    %c0_i32_0 = arith.constant 0 : i32
    %c0_i32_1 = arith.constant 0 : i32
    return %arg0, %c0_i32, %c0_i32_0 : i32, i32, i32
  }
  func.func @transform_13(%arg0: i32) -> (i32, i32) {
    %c0_i32 = arith.constant 0 : i32
    %c0_i32_0 = arith.constant 0 : i32
    %c0_i32_1 = arith.constant 0 : i32
    return %c0_i32, %c0_i32_0 : i32, i32
  }
  func.func @transform_14(%arg0: i32) -> (i32, i32) {
    %c0_i32 = arith.constant 0 : i32
    %c0_i32_0 = arith.constant 0 : i32
    %c0_i32_1 = arith.constant 0 : i32
    return %c0_i32, %c0_i32_0 : i32, i32
  }
  func.func @transform_15(%arg0: i32) -> (i32, i32) {
    %c0_i32 = arith.constant 0 : i32
    %c0_i32_0 = arith.constant 0 : i32
    %c0_i32_1 = arith.constant 0 : i32
    return %c0_i32, %c0_i32_0 : i32, i32
  }
  func.func @transform_16(%arg0: i32) -> (i32, i32) {
    %c0_i32 = arith.constant 0 : i32
    %c0_i32_0 = arith.constant 0 : i32
    %c0_i32_1 = arith.constant 0 : i32
    return %c0_i32, %c0_i32_0 : i32, i32
  }
}

</mosaic_0001>

<bundles_post_ra>
// kernel: vqgan_transformer_forward.2
= control target key start
LH: loop header
LB: loop body
LE: loop exit
PB: predicated region body
PF: predicated region fallthrough
CT: control target
= control target key end

     0   :  { %vm511_vm0 = vcmask 130112   ;;  %vm518_vm1 = vcmask 195712   ;;  %vm525_vm2 = vcmask 261312   ;;  %vm532_vm3 = vcmask 326912   ;;  %s1049_s1 = inlined_call_operand.vmem [shape: f32[128,128], index: 1, kind: input, shape index: {}]   ;;  %s1050_s0 = inlined_call_operand.vmem [shape: f32[128,128], index: 0, kind: input, shape index: {}]   ;;  %s1051_s3 = inlined_call_operand.vmem [shape: f32[128,128], index: 3, kind: input, shape index: {}]   ;;  %s1052_s2 = inlined_call_operand.vmem [shape: f32[1,128], index: 2, kind: input, shape index: {}]   ;;  %s1053_s4 = inlined_call_operand.vmem [shape: f32[1,128], index: 4, kind: input, shape index: {}]   ;;  %s1054_s5 = inlined_call_operand.vmem [shape: s32[1,128], index: 5, kind: output, shape index: {}]  }
   0x1   :  { %v51_v0 = vld [vmem:[%s1049_s1 + $0x78] sm:$0xff]  ;;  %v50_v1 = vld [vmem:[%s1049_s1 + $0x70] sm:$0xff]  ;;  %v49_v2 = vld [vmem:[%s1049_s1 + $0x68] sm:$0xff]  ;;  %vm539_vm4 = vcmask 392512   ;;  %vm546_vm5 = vcmask 458112   ;;  %vm553_vm6 = vcmask 523712  }
   0x2   :  { %682 = vmatprep.subr.mxu0 %v51_v0  ;;  %v48_v3 = vld [vmem:[%s1049_s1 + $0x60] sm:$0xff]  ;;  %v47_v5 = vld [vmem:[%s1049_s1 + $0x58] sm:$0xff]  ;;  %v46_v6 = vld [vmem:[%s1049_s1 + $0x50] sm:$0xff]  ;;  %vm560_vm7 = vcmask 589312   ;;  %vm567_vm8 = vcmask 654912   ;;  %vm574_vm9 = vcmask 720512  }
   0x3   :  { %683 = vmatpush3.msra.mxu0 %v51_v0  ;;  %v20_v4 = vld [vmem:[%s1050_s0] sm:$0xff]  ;;  %v45_v7 = vld [vmem:[%s1049_s1 + $0x48] sm:$0xff]  ;;  %v267_v8 = vld [vmem:[%s1051_s3 + $0x78] sm:$0xff]  ;;  %vm581_vm10 = vcmask 786112   ;;  %vm588_vm11 = vcmask 851712   ;;  %vm595_vm12 = vcmask 917312  }
   0x4   :  { %684 = vmatprep.subr.mxu0 %v50_v1  ;;  %714 = vmatprep.mubr.f32.mxu0 %v20_v4  ;;  %v266_v9 = vld [vmem:[%s1051_s3 + $0x70] sm:$0xff]  ;;  %v44_v10 = vld [vmem:[%s1049_s1 + $0x40] sm:$0xff]  ;;  %v43_v11 = vld [vmem:[%s1049_s1 + $0x38] sm:$0xff]  ;;  %vm602_vm13 = vcmask 982912   ;;  %vm609_vm14 = vcmask 1048512  }
   0x5   :  { %685 = vmatpush3.msra.mxu0 %v50_v1  ;;  %738 = vmatprep.subr.mxu1 %v267_v8  ;;  %v265_v12 = vld [vmem:[%s1051_s3 + $0x68] sm:$0xff]  ;;  %v42_v13 = vld [vmem:[%s1049_s1 + $0x30] sm:$0xff]  ;;  %v264_v15 = vld [vmem:[%s1051_s3 + $0x60] sm:$0xff] }
   0x6   :  { %686 = vmatprep.subr.mxu0 %v49_v2  ;;  %739 = vmatpush3.xpose.msra.mxu1 %v267_v8  ;;  %v41_v14 = vld [vmem:[%s1049_s1 + $0x28] sm:$0xff]  ;;  %v40_v16 = vld [vmem:[%s1049_s1 + $0x20] sm:$0xff]  ;;  %v39_v17 = vld [vmem:[%s1049_s1 + $0x18] sm:$0xff] }
   0x7   :  { %687 = vmatpush3.msra.mxu0 %v49_v2  ;;  %740 = vmatprep.subr.mxu1 %v266_v9  ;;  %v263_v18 = vld [vmem:[%s1051_s3 + $0x58] sm:$0xff]  ;;  %v38_v19 = vld [vmem:[%s1049_s1 + $0x10] sm:$0xff]  ;;  %v37_v20 = vld [vmem:[%s1049_s1 + $0x8] sm:$0xff] }
   0x8   :  { %688 = vmatprep.subr.mxu0 %v48_v3  ;;  %v262_v21 = vld [vmem:[%s1051_s3 + $0x50] sm:$0xff]  ;;  %v36_v22 = vld [vmem:[%s1049_s1] sm:$0xff]  ;;  %v21_v23 = vld [vmem:[%s1050_s0 + $0x8] sm:$0xff] }
   0x9   :  { %689 = vmatpush3.msra.mxu0 %v48_v3  ;;  %v261_v24 = vld [vmem:[%s1051_s3 + $0x48] sm:$0xff]  ;;  %v22_v25 = vld [vmem:[%s1050_s0 + $0x10] sm:$0xff]  ;;  %v23_v26 = vld [vmem:[%s1050_s0 + $0x18] sm:$0xff] }
   0xa   :  { %690 = vmatprep.subr.mxu0 %v47_v5  ;;  %741 = vmatpush3.xpose.msra.mxu1 %v266_v9  ;;  %v260_v27 = vld [vmem:[%s1051_s3 + $0x40] sm:$0xff]  ;;  %v25_v29 = vld [vmem:[%s1050_s0 + $0x28] sm:$0xff]  ;;  %v259_v30 = vld [vmem:[%s1051_s3 + $0x38] sm:$0xff] }
   0xb   :  { %691 = vmatpush3.msra.mxu0 %v47_v5  ;;  %742 = vmatprep.subr.mxu1 %v265_v12  ;;  %v24_v28 = vld [vmem:[%s1050_s0 + $0x20] sm:$0xff]  ;;  %v26_v31 = vld [vmem:[%s1050_s0 + $0x30] sm:$0xff]  ;;  %v27_v32 = vld [vmem:[%s1050_s0 + $0x38] sm:$0xff] }
   0xc   :  { %692 = vmatprep.subr.mxu0 %v46_v6  ;;  %v258_v33 = vld [vmem:[%s1051_s3 + $0x30] sm:$0xff]  ;;  %v28_v34 = vld [vmem:[%s1050_s0 + $0x40] sm:$0xff]  ;;  %v29_v35 = vld [vmem:[%s1050_s0 + $0x48] sm:$0xff] }
   0xd   :  { %693 = vmatpush3.msra.mxu0 %v46_v6  ;;  %v257_v36 = vld [vmem:[%s1051_s3 + $0x28] sm:$0xff]  ;;  %v30_v37 = vld [vmem:[%s1050_s0 + $0x50] sm:$0xff]  ;;  %v31_v38 = vld [vmem:[%s1050_s0 + $0x58] sm:$0xff] }
   0xe   :  { %694 = vmatprep.subr.mxu0 %v45_v7  ;;  %743 = vmatpush3.xpose.msra.mxu1 %v265_v12  ;;  %v256_v39 = vld [vmem:[%s1051_s3 + $0x20] sm:$0xff]  ;;  %v33_v41 = vld [vmem:[%s1050_s0 + $0x68] sm:$0xff]  ;;  %v255_v42 = vld [vmem:[%s1051_s3 + $0x18] sm:$0xff] }
   0xf   :  { %695 = vmatpush3.msra.mxu0 %v45_v7  ;;  %744 = vmatprep.subr.mxu1 %v264_v15  ;;  %v32_v40 = vld [vmem:[%s1050_s0 + $0x60] sm:$0xff]  ;;  %v34_v43 = vld [vmem:[%s1050_s0 + $0x70] sm:$0xff]  ;;  %v35_v44 = vld [vmem:[%s1050_s0 + $0x78] sm:$0xff] }
  0x10   :  { %696 = vmatprep.subr.mxu0 %v44_v10  ;;  %v254_v45 = vld [vmem:[%s1051_s3 + $0x10] sm:$0xff]  ;;  %v253_v46 = vld [vmem:[%s1051_s3 + $0x8] sm:$0xff]  ;;  %v252_v47 = vld [vmem:[%s1051_s3] sm:$0xff] }
  0x11   :  { %697 = vmatpush3.msra.mxu0 %v44_v10  ;;  %v971_v48 = vld [vmem:[%s1052_s2] ss:$0 sm:$0xff] }
  0x12   :  { %698 = vmatprep.subr.mxu0 %v43_v11  ;;  %745 = vmatpush3.xpose.msra.mxu1 %v264_v15 }
  0x13   :  { %699 = vmatpush3.msra.mxu0 %v43_v11  ;;  %746 = vmatprep.subr.mxu1 %v263_v18 }
  0x14   :  { %700 = vmatprep.subr.mxu0 %v42_v13 }
  0x15   :  { %701 = vmatpush3.msra.mxu0 %v42_v13 }
  0x16   :  { %702 = vmatprep.subr.mxu0 %v41_v14  ;;  %747 = vmatpush3.xpose.msra.mxu1 %v263_v18 }
  0x17   :  { %703 = vmatpush3.msra.mxu0 %v41_v14  ;;  %748 = vmatprep.subr.mxu1 %v262_v21 }
  0x18   :  { %704 = vmatprep.subr.mxu0 %v40_v16 }
  0x19   :  { %705 = vmatpush3.msra.mxu0 %v40_v16 }
  0x1a   :  { %706 = vmatprep.subr.mxu0 %v39_v17  ;;  %749 = vmatpush3.xpose.msra.mxu1 %v262_v21 }
  0x1b   :  { %707 = vmatpush3.msra.mxu0 %v39_v17  ;;  %750 = vmatprep.subr.mxu1 %v261_v24 }
  0x1c   :  { %708 = vmatprep.subr.mxu0 %v38_v19 }
  0x1d   :  { %709 = vmatpush3.msra.mxu0 %v38_v19 }
  0x1e   :  { %710 = vmatprep.subr.mxu0 %v37_v20  ;;  %751 = vmatpush3.xpose.msra.mxu1 %v261_v24 }
  0x1f   :  { %711 = vmatpush3.msra.mxu0 %v37_v20  ;;  %752 = vmatprep.subr.mxu1 %v260_v27 }
  0x20   :  { %712 = vmatprep.subr.mxu0 %v36_v22 }
  0x21   :  { %713 = vmatpush3.msra.mxu0 %v36_v22 }
  0x22   :  { %715 = vmatmul.mubr.f32.vlgmr.msra.gmra.mxu0 %v21_v23  ;;  %753 = vmatpush3.xpose.msra.mxu1 %v260_v27 }
  0x23   :  { %717 = vmatprep.mubr.f32.mxu0 %v22_v25  ;;  %754 = vmatprep.subr.mxu1 %v259_v30 }
  0x26   :  { %718 = vmatmul.mubr.f32.gmra.mxu0 %v23_v26  ;;  %755 = vmatpush3.xpose.msra.mxu1 %v259_v30 }
  0x27   :  { %720 = vmatprep.mubr.f32.mxu0 %v24_v28  ;;  %756 = vmatprep.subr.mxu1 %v258_v33 }
  0x2a   :  { %721 = vmatmul.mubr.f32.gmra.mxu0 %v25_v29  ;;  %757 = vmatpush3.xpose.msra.mxu1 %v258_v33 }
  0x2b   :  { %723 = vmatprep.mubr.f32.mxu0 %v26_v31  ;;  %758 = vmatprep.subr.mxu1 %v257_v36 }
  0x2e   :  { %724 = vmatmul.mubr.f32.gmra.mxu0 %v27_v32  ;;  %759 = vmatpush3.xpose.msra.mxu1 %v257_v36 }
  0x2f   :  { %726 = vmatprep.mubr.f32.mxu0 %v28_v34  ;;  %760 = vmatprep.subr.mxu1 %v256_v39 }
  0x32   :  { %727 = vmatmul.mubr.f32.gmra.mxu0 %v29_v35  ;;  %761 = vmatpush3.xpose.msra.mxu1 %v256_v39 }
  0x33   :  { %729 = vmatprep.mubr.f32.mxu0 %v30_v37  ;;  %762 = vmatprep.subr.mxu1 %v255_v42 }
  0x36   :  { %730 = vmatmul.mubr.f32.gmra.mxu0 %v31_v38  ;;  %763 = vmatpush3.xpose.msra.mxu1 %v255_v42  ;;  %v992_v42 = vld [vmem:[%s1053_s4] ss:$0 sm:$0xff] }
  0x37   :  { %732 = vmatprep.mubr.f32.mxu0 %v32_v40  ;;  %764 = vmatprep.subr.mxu1 %v254_v45 }
  0x3a   :  { %733 = vmatmul.mubr.f32.gmra.mxu0 %v33_v41  ;;  %765 = vmatpush3.xpose.msra.mxu1 %v254_v45 }
  0x3b   :  { %735 = vmatprep.mubr.f32.mxu0 %v34_v43  ;;  %766 = vmatprep.subr.mxu1 %v253_v46 }
  0x3e   :  { %736 = vmatmul.mubr.f32.gmra.mxu0 %v35_v44  ;;  %767 = vmatpush3.xpose.msra.mxu1 %v253_v46 }
  0x3f   :  { %768 = vmatprep.subr.mxu1 %v252_v47 }
  0x42   :  { %769 = vmatpush3.xpose.msra.mxu1 %v252_v47 }
  0xe2   :  { %v716_v49 = vpop.f32.mrf.mxu0 }
  0xe3   :  { %v131_v50 = vadd.f32 %v716_v49, %v971_v48 }
  0xe4   :  { %v125_v51 = vpop.f32.mrf.mxu0 }
  0xe5   :  { %v126_v52 = vadd.f32 %v971_v48, %v125_v51  ;;  %v205_v53 = vmul.f32 %v131_v50, %v131_v50 }
  0xe6   :  { %v719_v54 = vpop.f32.mrf.mxu0 }
  0xe7   :  { %v141_v55 = vadd.f32 %v719_v54, %v971_v48  ;;  %222 = vadd.xlane.f32.xlu0 %v205_v53  ;;  %770 = vmatprep.mubr.f32.mxu1 %v126_v52  ;;  %v204_v60 = vmul.f32 %v126_v52, %v126_v52 }
  0xe8   :  { %v135_v56 = vpop.f32.mrf.mxu0  ;;  %771 = vmatmul.mubr.f32.vlgmr.msra.gmra.mxu1 %v131_v50 }
  0xe9   :  { %v136_v57 = vadd.f32 %v971_v48, %v135_v56  ;;  %v207_v58 = vmul.f32 %v141_v55, %v141_v55 }
  0xea   :  { %v722_v59 = vpop.f32.mrf.mxu0 }
  0xeb   :  { %226 = vadd.xlane.f32.xlu1 %v207_v58  ;;  %773 = vmatprep.mubr.f32.mxu1 %v136_v57  ;;  %v151_v62 = vadd.f32 %v722_v59, %v971_v48  ;;  %v206_v0 = vmul.f32 %v136_v57, %v136_v57 }
  0xec   :  { %220 = vadd.xlane.f32.xlu0 %v204_v60  ;;  %v145_v61 = vpop.f32.mrf.mxu0  ;;  %774 = vmatmul.mubr.f32.gmra.mxu1 %v141_v55 }
  0xed   :  { %v146_v63 = vadd.f32 %v971_v48, %v145_v61  ;;  %v209_v6 = vmul.f32 %v151_v62, %v151_v62 }
  0xee   :  { %v725_v1 = vpop.f32.mrf.mxu0 }
  0xef   :  { %224 = vadd.xlane.f32.xlu1 %v206_v0  ;;  %776 = vmatprep.mubr.f32.mxu1 %v146_v63  ;;  %v208_v2 = vmul.f32 %v146_v63, %v146_v63  ;;  %v161_v4 = vadd.f32 %v725_v1, %v971_v48 }
  0xf0   :  { %v155_v3 = vpop.f32.mrf.mxu0  ;;  %777 = vmatmul.mubr.f32.gmra.mxu1 %v151_v62 }
  0xf1   :  { %v156_v5 = vadd.f32 %v971_v48, %v155_v3  ;;  %228 = vadd.xlane.f32.xlu0 %v208_v2  ;;  %v211_v12 = vmul.f32 %v161_v4, %v161_v4 }
  0xf2   :  { %v728_v7 = vpop.f32.mrf.mxu0 }
  0xf3   :  { %230 = vadd.xlane.f32.xlu1 %v209_v6  ;;  %779 = vmatprep.mubr.f32.mxu1 %v156_v5  ;;  %v210_v8 = vmul.f32 %v156_v5, %v156_v5  ;;  %v171_v10 = vadd.f32 %v728_v7, %v971_v48 }
  0xf4   :  { %v165_v9 = vpop.f32.mrf.mxu0  ;;  %780 = vmatmul.mubr.f32.gmra.mxu1 %v161_v4 }
  0xf5   :  { %v166_v11 = vadd.f32 %v971_v48, %v165_v9  ;;  %232 = vadd.xlane.f32.xlu0 %v210_v8  ;;  %v213_v18 = vmul.f32 %v171_v10, %v171_v10 }
  0xf6   :  { %v731_v13 = vpop.f32.mrf.mxu0 }
  0xf7   :  { %234 = vadd.xlane.f32.xlu1 %v211_v12  ;;  %782 = vmatprep.mubr.f32.mxu1 %v166_v11  ;;  %v212_v14 = vmul.f32 %v166_v11, %v166_v11  ;;  %v181_v16 = vadd.f32 %v731_v13, %v971_v48 }
  0xf8   :  { %v175_v15 = vpop.f32.mrf.mxu0  ;;  %783 = vmatmul.mubr.f32.gmra.mxu1 %v171_v10 }
  0xf9   :  { %v176_v17 = vadd.f32 %v971_v48, %v175_v15  ;;  %236 = vadd.xlane.f32.xlu0 %v212_v14  ;;  %v215_v24 = vmul.f32 %v181_v16, %v181_v16 }
  0xfa   :  { %v734_v19 = vpop.f32.mrf.mxu0 }
  0xfb   :  { %238 = vadd.xlane.f32.xlu1 %v213_v18  ;;  %785 = vmatprep.mubr.f32.mxu1 %v176_v17  ;;  %v214_v20 = vmul.f32 %v176_v17, %v176_v17  ;;  %v191_v22 = vadd.f32 %v734_v19, %v971_v48 }
  0xfc   :  { %v185_v21 = vpop.f32.mrf.mxu0  ;;  %786 = vmatmul.mubr.f32.gmra.mxu1 %v181_v16 }
  0xfd   :  { %v186_v23 = vadd.f32 %v971_v48, %v185_v21  ;;  %240 = vadd.xlane.f32.xlu0 %v214_v20  ;;  %v217_v30 = vmul.f32 %v191_v22, %v191_v22 }
  0xfe   :  { %v737_v25 = vpop.f32.mrf.mxu0 }
  0xff   :  { %242 = vadd.xlane.f32.xlu1 %v215_v24  ;;  %788 = vmatprep.mubr.f32.mxu1 %v186_v23  ;;  %v216_v26 = vmul.f32 %v186_v23, %v186_v23  ;;  %v201_v28 = vadd.f32 %v737_v25, %v971_v48 }
 0x100   :  { %v195_v27 = vpop.f32.mrf.mxu0  ;;  %789 = vmatmul.mubr.f32.gmra.mxu1 %v191_v22 }
 0x101   :  { %v196_v29 = vadd.f32 %v971_v48, %v195_v27  ;;  %244 = vadd.xlane.f32.xlu0 %v216_v26  ;;  %v219_v32 = vmul.f32 %v201_v28, %v201_v28 }
 0x103   :  { %246 = vadd.xlane.f32.xlu1 %v217_v30  ;;  %791 = vmatprep.mubr.f32.mxu1 %v196_v29  ;;  %v218_v31 = vmul.f32 %v196_v29, %v196_v29 }
 0x104   :  { %792 = vmatmul.mubr.f32.gmra.mxu1 %v201_v28 }
 0x105   :  { %248 = vadd.xlane.f32.xlu0 %v218_v31 }
 0x107   :  { %250 = vadd.xlane.f32.xlu1 %v219_v32 }
 0x170   :  { %v223_v34 = vpop.xlane.xlu0 %222 }
 0x174   :  { %v227_v33 = vpop.xlane.xlu1 %226 }
 0x175   :  { %v221_v36 = vpop.xlane.xlu0 %220 }
 0x178   :  { %v225_v35 = vpop.xlane.xlu1 %224 }
 0x17a   :  { %v229_v40 = vpop.xlane.xlu0 %228 }
 0x17c   :  { %v231_v37 = vpop.xlane.xlu1 %230 }
 0x17e   :  { %v233_v54 = vpop.xlane.xlu0 %232 }
 0x180   :  { %v235_v49 = vpop.xlane.xlu1 %234 }
 0x182   :  { %v237_v4 = vpop.xlane.xlu0 %236 }
 0x184   :  { %v239_v63 = vpop.xlane.xlu1 %238 }
 0x186   :  { %v241_v18 = vpop.xlane.xlu0 %240 }
 0x188   :  { %v243_v13 = vpop.xlane.xlu1 %242 }
 0x18a   :  { %v245_v32 = vpop.xlane.xlu0 %244 }
 0x18c   :  { %v247_v27 = vpop.xlane.xlu1 %246 }
 0x1a8   :  { %v772_v38 = vpop.f32.mrf.mxu1 }
 0x1a9   :  { %v414_v39 = vmul.f32 2.0, %v772_v38 }
 0x1aa   :  { %v334_v41 = vpop.f32.mrf.mxu1 }
 0x1ab   :  { %v430_v43 = vsub.f32 %v223_v34, %v414_v39  ;;  %v413_v44 = vmul.f32 2.0, %v334_v41  ;;  %v251_v41 = vpop.xlane.xlu1 %250 }
 0x1ac   :  { %v775_v45 = vpop.f32.mrf.mxu1 }
 0x1ad   :  { %v429_v46 = vsub.f32 %v221_v36, %v413_v44  ;;  %v416_v47 = vmul.f32 2.0, %v775_v45  ;;  %v453_v48 = vadd.f32 %v992_v42, %v430_v43 }
 0x1ae   :  { %v344_v50 = vpop.f32.mrf.mxu1 }
 0x1af   :  { %v432_v51 = vsub.f32 %v227_v33, %v416_v47  ;;  %v415_v52 = vmul.f32 2.0, %v344_v50  ;;  %470 = vmin.index.xlane.f32.xlu1 %v453_v48  ;;  %v452_v53 = vadd.f32 %v992_v42, %v429_v46  ;;  %v249_v47 = vpop.xlane.xlu0 %248 }
 0x1b0   :  { %v778_v55 = vpop.f32.mrf.mxu1 }
 0x1b1   :  { %v431_v56 = vsub.f32 %v225_v35, %v415_v52  ;;  %v418_v57 = vmul.f32 2.0, %v778_v55  ;;  %468 = vmin.index.xlane.f32.xlu0 %v452_v53  ;;  %v455_v58 = vadd.f32 %v992_v42, %v432_v51  ;;  %v500_v51 = vlaneseq }
 0x1b2   :  { %v354_v59 = vpop.f32.mrf.mxu1 }
 0x1b3   :  { %v434_v60 = vsub.f32 %v231_v37, %v418_v57  ;;  %v417_v61 = vmul.f32 2.0, %v354_v59  ;;  %474 = vmin.index.xlane.f32.xlu1 %v455_v58  ;;  %v454_v62 = vadd.f32 %v992_v42, %v431_v56  ;;  %v1010_v52 = vand.u32 127, %v500_v51 }
 0x1b4   :  { %v781_v0 = vpop.f32.mrf.mxu1  ;;  %v1012_v53 = vshrl.u32 %v500_v51, 7 }
 0x1b5   :  { %v433_v1 = vsub.f32 %v229_v40, %v417_v61  ;;  %v420_v2 = vmul.f32 2.0, %v781_v0  ;;  %472 = vmin.index.xlane.f32.xlu0 %v454_v62  ;;  %v457_v3 = vadd.f32 %v992_v42, %v434_v60  ;;  %v513_v55 = vadd.s32 4294967280, %v1010_v52 }
 0x1b6   :  { %v364_v5 = vpop.f32.mrf.mxu1  ;;  %v504_v57 = vsub.s32 %v1010_v52, %v1012_v53  ;;  %v520_v60 = vadd.s32 4294967272, %v1010_v52  ;;  %v527_v61 = vadd.s32 4294967264, %v1010_v52 }
 0x1b7   :  { %v436_v6 = vsub.f32 %v235_v49, %v420_v2  ;;  %v419_v7 = vmul.f32 2.0, %v364_v5  ;;  %478 = vmin.index.xlane.f32.xlu1 %v457_v3  ;;  %v456_v8 = vadd.f32 %v992_v42, %v433_v1  ;;  %v534_v3 = vadd.s32 4294967256, %v1010_v52 }
 0x1b8   :  { %v784_v9 = vpop.f32.mrf.mxu1  ;;  %v523_v1 = vsub.s32 %v520_v60, %v1012_v53  ;;  %v530_v5 = vsub.s32 %v527_v61, %v1012_v53 }
 0x1b9   :  { %v435_v10 = vsub.f32 %v233_v54, %v419_v7  ;;  %v422_v11 = vmul.f32 2.0, %v784_v9  ;;  %476 = vmin.index.xlane.f32.xlu0 %v456_v8  ;;  %v459_v12 = vadd.f32 %v992_v42, %v436_v6  ;;  %v506_v54 = vadd.s32 4294967288, %v1010_v52 }
 0x1ba   :  { %v374_v14 = vpop.f32.mrf.mxu1  ;;  %v541_v6 = vadd.s32 4294967248, %v1010_v52 }
 0x1bb   :  { %v438_v15 = vsub.f32 %v239_v63, %v422_v11  ;;  %v421_v16 = vmul.f32 2.0, %v374_v14  ;;  %482 = vmin.index.xlane.f32.xlu1 %v459_v12  ;;  %v458_v17 = vadd.f32 %v992_v42, %v435_v10  ;;  %v509_v58 = vsub.s32 %v506_v54, %v1012_v53 }
 0x1bc   :  { %v787_v19 = vpop.f32.mrf.mxu1  ;;  %v537_v11 = vsub.s32 %v534_v3, %v1012_v53 }
 0x1bd   :  { %v437_v20 = vsub.f32 %v237_v4, %v421_v16  ;;  %v424_v21 = vmul.f32 2.0, %v787_v19  ;;  %480 = vmin.index.xlane.f32.xlu0 %v458_v17  ;;  %v461_v22 = vadd.f32 %v992_v42, %v438_v15  ;;  %v544_v15 = vsub.s32 %v541_v6, %v1012_v53 }
 0x1be   :  { %v384_v23 = vpop.f32.mrf.mxu1  ;;  %v555_v16 = vadd.s32 4294967232, %v1010_v52 }
 0x1bf   :  { %v440_v24 = vsub.f32 %v243_v13, %v424_v21  ;;  %v423_v25 = vmul.f32 2.0, %v384_v23  ;;  %486 = vmin.index.xlane.f32.xlu1 %v461_v22  ;;  %v460_v26 = vadd.f32 %v992_v42, %v437_v20  ;;  %v548_v13 = vadd.s32 4294967240, %v1010_v52 }
 0x1c0   :  { %v790_v28 = vpop.f32.mrf.mxu1  ;;  %v562_v23 = vadd.s32 4294967224, %v1010_v52 }
 0x1c1   :  { %v439_v29 = vsub.f32 %v241_v18, %v423_v25  ;;  %v426_v30 = vmul.f32 2.0, %v790_v28  ;;  %484 = vmin.index.xlane.f32.xlu0 %v460_v26  ;;  %v463_v31 = vadd.f32 %v992_v42, %v440_v24  ;;  %v551_v21 = vsub.s32 %v548_v13, %v1012_v53 }
 0x1c2   :  { %v394_v33 = vpop.f32.mrf.mxu1  ;;  %v558_v25 = vsub.s32 %v555_v16, %v1012_v53  ;;  %v569_v26 = vadd.s32 4294967216, %v1010_v52 }
 0x1c3   :  { %v442_v34 = vsub.f32 %v247_v27, %v426_v30  ;;  %v425_v35 = vmul.f32 2.0, %v394_v33  ;;  %490 = vmin.index.xlane.f32.xlu1 %v463_v31  ;;  %v462_v36 = vadd.f32 %v992_v42, %v439_v29  ;;  %v565_v31 = vsub.s32 %v562_v23, %v1012_v53 }
 0x1c4   :  { %v793_v37 = vpop.f32.mrf.mxu1  ;;  %v576_v33 = vadd.s32 4294967208, %v1010_v52 }
 0x1c5   :  { %v441_v38 = vsub.f32 %v245_v32, %v425_v35  ;;  %v428_v39 = vmul.f32 2.0, %v793_v37  ;;  %488 = vmin.index.xlane.f32.xlu0 %v462_v36  ;;  %v465_v40 = vadd.f32 %v992_v42, %v442_v34  ;;  %v572_v35 = vsub.s32 %v569_v26, %v1012_v53 }
 0x1c6   :  { %v404_v43 = vpop.f32.mrf.mxu1  ;;  %v583_v36 = vadd.s32 4294967200, %v1010_v52 }
 0x1c7   :  { %v444_v44 = vsub.f32 %v251_v41, %v428_v39  ;;  %v427_v45 = vmul.f32 2.0, %v404_v43  ;;  %494 = vmin.index.xlane.f32.xlu1 %v465_v40  ;;  %v464_v46 = vadd.f32 %v992_v42, %v441_v38  ;;  %v579_v41 = vsub.s32 %v576_v33, %v1012_v53 }
 0x1c9   :  { %v443_v48 = vsub.f32 %v249_v47, %v427_v45  ;;  %492 = vmin.index.xlane.f32.xlu0 %v464_v46  ;;  %v467_v49 = vadd.f32 %v992_v42, %v444_v44  ;;  %v590_v44 = vadd.s32 4294967192, %v1010_v52  ;;  %v586_v46 = vsub.s32 %v583_v36, %v1012_v53 }
 0x1ca   :  { %v597_v47 = vadd.s32 4294967184, %v1010_v52 }
 0x1cb   :  { %498 = vmin.index.xlane.f32.xlu1 %v467_v49  ;;  %v466_v50 = vadd.f32 %v992_v42, %v443_v48  ;;  %v516_v42 = vsub.s32 %v513_v55, %v1012_v53  ;;  %v593_v55 = vsub.s32 %v590_v44, %v1012_v53 }
 0x1cd   :  { %496 = vmin.index.xlane.f32.xlu0 %v466_v50  ;;  %v604_v50 = vadd.s32 4294967176, %v1010_v52 }
 0x1cf   :  { %v607_v60 = vsub.s32 %v604_v50, %v1012_v53 }
 0x238   :  { %v471_v56 = vpop.xlane.xlu1 %470 }
 0x239   :  { %v510_v0 = vrot.slane %v471_v56, %v509_v58  ;;  %v600_v58 = vsub.s32 %v597_v47, %v1012_v53 }
 0x23a   :  { %v469_v59 = vpop.xlane.xlu0 %468 }
 0x23b   :  { %v505_v62 = vrot.slane %v469_v59, %v504_v57 }
 0x23c   :  { %v475_v63 = vpop.xlane.xlu1 %474 }
 0x23d   :  { %v512_v7 = vsel %vm511_vm0, %v510_v0, %v505_v62  ;;  %v524_v10 = vrot.slane %v475_v63, %v523_v1 }
 0x23e   :  { %v473_v2 = vpop.xlane.xlu0 %472 }
 0x23f   :  { %v517_v4 = vrot.slane %v473_v2, %v516_v42 }
 0x240   :  { %v479_v8 = vpop.xlane.xlu1 %478 }
 0x241   :  { %v519_v9 = vsel %vm518_vm1, %v517_v4, %v512_v7  ;;  %v538_v20 = vrot.slane %v479_v8, %v537_v11 }
 0x242   :  { %v477_v12 = vpop.xlane.xlu0 %476  ;;  %v526_v17 = vsel %vm525_vm2, %v524_v10, %v519_v9 }
 0x243   :  { %v531_v14 = vrot.slane %v477_v12, %v530_v5 }
 0x244   :  { %v483_v18 = vpop.xlane.xlu1 %482 }
 0x245   :  { %v533_v19 = vsel %vm532_vm3, %v531_v14, %v526_v17  ;;  %v552_v30 = vrot.slane %v483_v18, %v551_v21 }
 0x246   :  { %v481_v22 = vpop.xlane.xlu0 %480  ;;  %v540_v27 = vsel %vm539_vm4, %v538_v20, %v533_v19 }
 0x247   :  { %v545_v24 = vrot.slane %v481_v22, %v544_v15 }
 0x248   :  { %v487_v28 = vpop.xlane.xlu1 %486 }
 0x249   :  { %v547_v29 = vsel %vm546_vm5, %v545_v24, %v540_v27  ;;  %v566_v40 = vrot.slane %v487_v28, %v565_v31 }
 0x24a   :  { %v485_v32 = vpop.xlane.xlu0 %484  ;;  %v554_v37 = vsel %vm553_vm6, %v552_v30, %v547_v29 }
 0x24b   :  { %v559_v34 = vrot.slane %v485_v32, %v558_v25 }
 0x24c   :  { %v491_v38 = vpop.xlane.xlu1 %490 }
 0x24d   :  { %v561_v39 = vsel %vm560_vm7, %v559_v34, %v554_v37  ;;  %v580_v54 = vrot.slane %v491_v38, %v579_v41 }
 0x24e   :  { %v489_v43 = vpop.xlane.xlu0 %488  ;;  %v568_v48 = vsel %vm567_vm8, %v566_v40, %v561_v39 }
 0x24f   :  { %v573_v45 = vrot.slane %v489_v43, %v572_v35 }
 0x250   :  { %v495_v49 = vpop.xlane.xlu1 %494 }
 0x251   :  { %v575_v51 = vsel %vm574_vm9, %v573_v45, %v568_v48  ;;  %v594_v62 = vrot.slane %v495_v49, %v593_v55 }
 0x252   :  { %v493_v56 = vpop.xlane.xlu0 %492  ;;  %v582_v59 = vsel %vm581_vm10, %v580_v54, %v575_v51 }
 0x253   :  { %v587_v57 = vrot.slane %v493_v56, %v586_v46 }
 0x254   :  { %v499_v61 = vpop.xlane.xlu1 %498 }
 0x255   :  { %v589_v42 = vsel %vm588_vm11, %v587_v57, %v582_v59  ;;  %v608_v0 = vrot.slane %v499_v61, %v607_v60 }
 0x256   :  { %v497_v63 = vpop.xlane.xlu0 %496  ;;  %v596_v1 = vsel %vm595_vm12, %v594_v62, %v589_v42 }
 0x257   :  { %v601_v52 = vrot.slane %v497_v63, %v600_v58 }
 0x259   :  { %v603_v2 = vsel %vm602_vm13, %v601_v52, %v596_v1 }
 0x25a   :  { %v610_v3 = vsel %vm609_vm14, %v608_v0, %v603_v2 }
 0x25b   :  { %611 = vst [vmem:[%s1054_s5] sm:$0x1] %v610_v3 }

// kernel: vqgan_transformer_forward.3
= control target key start
LH: loop header
LB: loop body
LE: loop exit
PB: predicated region body
PF: predicated region fallthrough
CT: control target
= control target key end

     0   :  { %s4271_s0 = inlined_call_operand.vmem [shape: f32[32,128], index: 0, kind: input, shape index: {}]   ;;  %s4272_s1 = inlined_call_operand.vmem [shape: f32[2,1,128], index: 1, kind: input, shape index: {}, may-alias: {1,7}]   ;;  %s4273_s2 = inlined_call_operand.vmem [shape: f32[2,1,128], index: 2, kind: input, shape index: {}, may-alias: {2,6,8,12}]   ;;  %s4274_s3 = inlined_call_operand.vmem [shape: bf16[2,128,384], index: 3, kind: input, shape index: {}]   ;;  %s4275_s4 = inlined_call_operand.vmem [shape: f32[2,1,384], index: 4, kind: input, shape index: {}]   ;;  %s4276_s5 = inlined_call_operand.vmem [shape: bf16[2,128,128], index: 5, kind: input, shape index: {}]   ;;  %s4277_s6 = inlined_call_operand.vmem [shape: f32[2,1,128], index: 6, kind: input, shape index: {}, may-alias: {2,6,8,12}]   ;;  %s4278_s7 = inlined_call_operand.vmem [shape: f32[2,1,128], index: 7, kind: input, shape index: {}, may-alias: {1,7}]   ;;  %s4279_s8 = inlined_call_operand.vmem [shape: f32[2,1,128], index: 8, kind: input, shape index: {}, may-alias: {2,6,8,12}]   ;;  %s4280_s9 = inlined_call_operand.vmem [shape: bf16[2,128,512], index: 9, kind: input, shape index: {}]   ;;  %s4281_s10 = inlined_call_operand.vmem [shape: f32[2,1,512], index: 10, kind: input, shape index: {}]   ;;  %s4282_s11 = inlined_call_operand.vmem [shape: bf16[2,512,128], index: 11, kind: input, shape index: {}]   ;;  %s4283_s12 = inlined_call_operand.vmem [shape: f32[2,1,128], index: 12, kind: input, shape index: {}, may-alias: {2,6,8,12}]   ;;  %s4284_s13 = inlined_call_operand.vmem [shape: f32[1,128], index: 13, kind: input, shape index: {}]   ;;  %s4285_s14 = inlined_call_operand.vmem [shape: f32[1,128], index: 14, kind: input, shape index: {}]   ;;  %s4286_s15 = inlined_call_operand.vmem [shape: bf16[128,128], index: 15, kind: input, shape index: {}]   ;;  %s4287_s16 = inlined_call_operand.hbm [shape: f32[32,128], index: 16, kind: output, shape index: {}]  }
   0x1   :  { %4291 = sst [smem:[#allocation7_spill]] %s4271_s0 }
   0x2   :  { %4292 = sst [smem:[#allocation8_spill]] %s4274_s3 }
   0x3   :  { %4293 = sst [smem:[#allocation9_spill]] %s4276_s5 }
   0x4   :  { %4294 = sst [smem:[#allocation10_spill]] %s4284_s13 }
   0x5   :  { %4295 = sst [smem:[#allocation11_spill]] %s4285_s14 }
   0x6   :  { %4296 = sst [smem:[#allocation12_spill]] %s4286_s15 }
   0x7   :  { %4297 = sst [smem:[#allocation13_spill]] %s4287_s16 }
   0x8   :  { %21 = vsyncpa [#allocation4], 0  ;;  %s3704_s21 = smov 0  }
   0x9 LB: > { %4298 = sst [smem:[#allocation6_spill]] %s3609_s21  ;;  %s3710_s22 = sadd.s32 4294967295, %s3609_s21   ;;  %s3609_s21 = sphi %s3704_s21, %s27_s21  }
   0xa   : > { %p2973_p0 = scmp.ge.s32.totalorder %s3609_s21, 1  ;;  %p554_p1 = scmp.lt.s32.totalorder %s3609_s21, 3 }
   0xc   : > { %p555_p2 = pnand %p2973_p0, %p554_p1 }
   0xd   : > { %p640_p3 = scmp.lt.s32.totalorder (!%p555_p2), %s3710_s22, 1  ;;  %s4299_s5 = sld [smem:[#allocation9_spill]] (!%p555_p2) }
   0xe   : > { %558 = sbr.rel (%p555_p2) target bundleno = 2884 (0xb44), region = 84  ;;  %s4300_s3 = sld [smem:[#allocation8_spill]] (!%p555_p2) }
   0xf   : > { %p2982_p4 = scmp.ne.s32.totalorder (!%p555_p2), %s3710_s22, 0 }
  0x13   : > { %s3716_s23 = scalar_select %p640_p3, %s3710_s22, 1 }
  0x15   : > { %s3321_s30 = smul.u32 192, %s3716_s23  ;;  %s3108_s0 = sshll.u32 %s3716_s23, 6 }
  0x16   : > { %s3322_s17 = smul.u32 3, %s3716_s23  ;;  %s3732_s20 = scalar_lea.vmem %s4299_s5, %s3108_s0 }
  0x17   : > { %s3737_s21 = scalar_lea.vmem %s4300_s3, %s3321_s30  ;;  %s3109_s24 = sshll.u32 %s3716_s23, 8 }
  0x18   : > { %s3746_s29 = scalar_lea.vmem %s4275_s4, %s3322_s17  ;;  %s3760_s3 = scalar_lea.vmem %s4280_s9, %s3109_s24 }
  0x19   : > { %s2979_s16 = sshll.u32 %s3716_s23, 2  ;;  %s3771_s13 = scalar_lea.vmem %s4282_s11, %s3109_s24 }
  0x1a   : > { %s3766_s17 = scalar_lea.vmem %s4281_s10, %s2979_s16  ;;  %s685_s19 = scalar_lea.vmem %s4283_s12, %s3716_s23 }
  0x1b   : > { %690 = sbr.rel (%p2982_p4) target bundleno = 36 (0x24), region = 88  ;;  %s4301_s5 = sld [smem:[#allocation7_spill]] (!%p2982_p4) }
  0x21   : > { %v691_v0 = vld [vmem:[%s4301_s5] sm:$0xff]  ;;  %v692_v1 = vld [vmem:[%s4301_s5 + $0x8] sm:$0xff]  ;;  %v693_v2 = vld [vmem:[%s4301_s5 + $0x10] sm:$0xff] }
  0x22   : > { %695 = vst [vmem:[#allocation2 + $0x10] sm:$0xff] %v691_v0  ;;  %696 = vst [vmem:[#allocation2] sm:$0xff] %v692_v1  ;;  %v694_v3 = vld [vmem:[%s4301_s5 + $0x18] sm:$0xff] }
  0x23   : > { %697 = vst [vmem:[#allocation2 + $0x18] sm:$0xff] %v693_v2  ;;  %698 = vst [vmem:[#allocation2 + $0x8] sm:$0xff] %v694_v3 }
  0x24 PF: > { %v3355_v8 = vld [vmem:[%s3737_s21 + $0xac] ss:$12 sps:$4 sm:$0xff]   ;;  %v3357_v9 = vld [vmem:[%s3737_s21 + $0xa8] ss:$12 sps:$4 sm:$0xff]   ;;  %v3360_v27 = vld [vmem:[%s3737_s21 + $0xb0] ss:$12 sps:$4 sm:$0xff]   ;;  %s4302_s28 = scalar_lea.vmem %s4272_s1, %s3716_s23  ;;  %s4303_s30 = scalar_lea.vmem %s4273_s2, %s3716_s23 }
  0x25   : > { %949 = vmatprep.subr.bf16.mxu0 %v3355_v8  ;;  %v3358_v26 = vld [vmem:[%s3737_s21 + $0x94] ss:$12 sps:$4 sm:$0xff]   ;;  %v3361_v28 = vld [vmem:[%s3737_s21 + $0x90] ss:$12 sps:$4 sm:$0xff]   ;;  %3213 = vmatprep.subr.bf16.mxu1 %v3360_v27  ;;  %v3364_v30 = vld [vmem:[%s3737_s21 + $0x98] ss:$12 sps:$4 sm:$0xff]   ;;  %s4304_s14 = scalar_lea.vmem %s4277_s6, %s3716_s23  ;;  %s4305_s26 = scalar_lea.vmem %s4278_s7, %s3716_s23 }
  0x26   : > { %950 = vmatpush1.bf16.msra.mxu0 %v3357_v9  ;;  %3214 = vmatpush3.bf16.msra.mxu1 %v3360_v27  ;;  %v3362_v29 = vld [vmem:[%s3737_s21 + $0x7c] ss:$12 sps:$4 sm:$0xff]   ;;  %v3365_v31 = vld [vmem:[%s3737_s21 + $0x78] ss:$12 sps:$4 sm:$0xff]   ;;  %v3368_v33 = vld [vmem:[%s3737_s21 + $0x80] ss:$12 sps:$4 sm:$0xff]  }
  0x27   : > { %951 = vmatprep.subr.bf16.mxu0 %v3358_v26  ;;  %3215 = vmatprep.subr.bf16.mxu1 %v3364_v30  ;;  %v3366_v32 = vld [vmem:[%s3737_s21 + $0x64] ss:$12 sps:$4 sm:$0xff]   ;;  %v3369_v34 = vld [vmem:[%s3737_s21 + $0x60] ss:$12 sps:$4 sm:$0xff]   ;;  %v3372_v36 = vld [vmem:[%s3737_s21 + $0x68] ss:$12 sps:$4 sm:$0xff]  }
  0x28   : > { %v3370_v35 = vld [vmem:[%s3737_s21 + $0x4c] ss:$12 sps:$4 sm:$0xff]   ;;  %v3373_v37 = vld [vmem:[%s3737_s21 + $0x48] ss:$12 sps:$4 sm:$0xff]   ;;  %v3376_v39 = vld [vmem:[%s3737_s21 + $0x50] ss:$12 sps:$4 sm:$0xff]  }
  0x29   : > { %v699_v4 = vld [vmem:[#allocation2 + $0x10] sm:$0xff]  ;;  %v700_v6 = vld [vmem:[#allocation2] sm:$0xff]  ;;  %v3378_v41 = vld [vmem:[%s3737_s21 + $0x1c] ss:$12 sps:$4 sm:$0xff]   ;;  %v3611_v43 = vmov 0   ;;  %vm3613_vm0 = vmmov 0  }
  0x2a   : > { %v701_v5 = vld [vmem:[#allocation2 + $0x18] sm:$0xff]  ;;  %705 = vadd.xlane.f32.xlu0 %v699_v4  ;;  %v702_v7 = vld [vmem:[#allocation2 + $0x8] sm:$0xff]  ;;  %952 = vmatpush1.bf16.msra.mxu0 %v3361_v28  ;;  %v3374_v38 = vld [vmem:[%s3737_s21 + $0x34] ss:$12 sps:$4 sm:$0xff]   ;;  %vm1062_vm1 = vcmask 523264   ;;  %vm1114_vm4 = vcmask 130048  }
  0x2b   : > { %709 = vadd.xlane.f32.xlu1 %v701_v5  ;;  %953 = vmatprep.subr.bf16.mxu0 %v3362_v29  ;;  %v3377_v40 = vld [vmem:[%s3737_s21 + $0x30] ss:$12 sps:$4 sm:$0xff]   ;;  %v3380_v42 = vld [vmem:[%s3737_s21 + $0x38] ss:$12 sps:$4 sm:$0xff]   ;;  %v3384_v46 = vld [vmem:[%s3737_s21 + $0x20] ss:$12 sps:$4 sm:$0xff]  }
  0x2c   : > { %3216 = vmatpush3.bf16.msra.mxu1 %v3364_v30  ;;  %981 = vmatprep.mubr.bf16.mxu0 %v3611_v43  ;;  %v3381_v44 = vld [vmem:[%s3737_s21 + $0x18] ss:$12 sps:$4 sm:$0xff]   ;;  %v3385_v47 = vld [vmem:[%s3737_s21] ss:$12 sps:$4 sm:$0xff]   ;;  %v3386_v48 = vld [vmem:[%s3737_s21 + $0x8] ss:$12 sps:$4 sm:$0xff]  }
  0x2d   : > { %3217 = vmatprep.subr.bf16.mxu1 %v3368_v33  ;;  %v3382_v45 = vld [vmem:[%s3737_s21 + $0x4] ss:$12 sps:$4 sm:$0xff]   ;;  %v2983_v63 = vld [vmem:[%s4302_s28] ss:$0 sm:$0xff]  ;;  %s4306_s21 = scalar_lea.vmem %s4279_s8, %s3716_s23  ;;  %p3093_p5 = scmp.ne.s32.totalorder %s3710_s22, 1 }
  0x2e   : > { %707 = vadd.xlane.f32.xlu0 %v700_v6  ;;  %954 = vmatpush1.bf16.msra.mxu0 %v3365_v31  ;;  %s4307_s18 = sld [smem:[#allocation12_spill]] (!%p3093_p5) }
  0x2f   : > { %711 = vadd.xlane.f32.xlu1 %v702_v7  ;;  %955 = vmatprep.subr.bf16.mxu0 %v3366_v32  ;;  %s4308_s23 = sld [smem:[#allocation10_spill]] (!%p3093_p5) }
  0x30   : > { %3218 = vmatpush3.bf16.msra.mxu1 %v3368_v33  ;;  %s4309_s15 = sld [smem:[#allocation11_spill]] (!%p3093_p5) }
  0x31   : > { %3219 = vmatprep.subr.bf16.mxu1 %v3372_v36 }
  0x32   : > { %956 = vmatpush1.bf16.msra.mxu0 %v3369_v34 }
  0x33   : > { %957 = vmatprep.subr.bf16.mxu0 %v3370_v35 }
  0x34   : > { %3220 = vmatpush3.bf16.msra.mxu1 %v3372_v36 }
  0x35   : > { %3221 = vmatprep.subr.bf16.mxu1 %v3376_v39 }
  0x36   : > { %958 = vmatpush1.bf16.msra.mxu0 %v3373_v37 }
  0x37   : > { %959 = vmatprep.subr.bf16.mxu0 %v3374_v38 }
  0x38   : > { %3222 = vmatpush3.bf16.msra.mxu1 %v3376_v39 }
  0x39   : > { %3223 = vmatprep.subr.bf16.mxu1 %v3380_v42 }
  0x3a   : > { %960 = vmatpush1.bf16.msra.mxu0 %v3377_v40 }
  0x3b   : > { %961 = vmatprep.subr.bf16.mxu0 %v3378_v41 }
  0x3c   : > { %3224 = vmatpush3.bf16.msra.mxu1 %v3380_v42 }
  0x3d   : > { %3225 = vmatprep.subr.bf16.mxu1 %v3384_v46 }
  0x3e   : > { %962 = vmatpush1.bf16.msra.mxu0 %v3381_v44 }
  0x3f   : > { %963 = vmatprep.subr.bf16.mxu0 %v3382_v45 }
  0x40   : > { %3226 = vmatpush3.bf16.msra.mxu1 %v3384_v46 }
  0x41   : > { %3227 = vmatprep.subr.bf16.mxu1 %v3386_v48 }
  0x42   : > { %964 = vmatpush1.bf16.msra.mxu0 %v3385_v47 }
  0x44   : > { %3228 = vmatpush3.bf16.msra.mxu1 %v3386_v48 }
  0xb3   : > { %v706_v10 = vpop.xlane.xlu0 %705 }
  0xb4   : > { %v710_v11 = vpop.xlane.xlu1 %709  ;;  %v714_v12 = vmul.f32 0.0078125, %v706_v10 }
  0xb5   : > { %v716_v13 = vmul.f32 0.0078125, %v710_v11 }
  0xb6   : > { %v3792_v14 = vsub.f32 %v699_v4, %v714_v12  ;;  %v2984_v4 = vld [vmem:[%s4303_s30] ss:$0 sm:$0xff] }
  0xb7   : > { %v3794_v15 = vsub.f32 %v701_v5, %v716_v13  ;;  %v708_v16 = vpop.xlane.xlu0 %707 }
  0xb8   : > { %v712_v17 = vpop.xlane.xlu1 %711  ;;  %v715_v18 = vmul.f32 0.0078125, %v708_v16  ;;  %v722_v19 = vmul.f32 %v3792_v14, %v3792_v14 }
  0xb9   : > { %v717_v20 = vmul.f32 0.0078125, %v712_v17  ;;  %v724_v23 = vmul.f32 %v3794_v15, %v3794_v15 }
  0xba   : > { %v3798_v21 = vsub.f32 %v700_v6, %v715_v18  ;;  %726 = vadd.xlane.f32.xlu0 %v722_v19  ;;  %v806_v18 = vlaneseq }
  0xbb   : > { %v3800_v22 = vsub.f32 %v702_v7, %v717_v20 }
  0xbc   : > { %v723_v24 = vmul.f32 %v3798_v21, %v3798_v21  ;;  %v3853_v19 = vshrl.u32 %v806_v18, 7 }
  0xbd   : > { %v725_v25 = vmul.f32 %v3800_v22, %v3800_v22 }
  0xbe   : > { %730 = vadd.xlane.f32.xlu0 %v724_v23  ;;  %728 = vadd.xlane.f32.xlu1 %v723_v24  ;;  %v808_v20 = vsub.s32 0, %v3853_v19  ;;  %v812_v23 = vsub.s32 1, %v3853_v19 }
  0xc2   : > { %732 = vadd.xlane.f32.xlu1 %v725_v25 }
 0x143   : > { %v727_v49 = vpop.xlane.xlu0 %726 }
 0x144   : > { %v734_v50 = vmul.f32 0.0078125, %v727_v49 }
 0x146   : > { %v738_v51 = vadd.f32 1e-05, %v734_v50 }
 0x147   : > { %v729_v52 = vpop.xlane.xlu1 %728  ;;  %v731_v53 = vpop.xlane.xlu0 %730 }
 0x148   : > { %3475 = vrsqrt.f32 %v738_v51  ;;  %v735_v54 = vmul.f32 0.0078125, %v729_v52  ;;  %v736_v55 = vmul.f32 0.0078125, %v731_v53 }
 0x14a   : > { %v739_v56 = vadd.f32 1e-05, %v735_v54  ;;  %v740_v57 = vadd.f32 1e-05, %v736_v55 }
 0x14b   : > { %v733_v58 = vpop.xlane.xlu1 %732 }
 0x14c   : > { %3477 = vrsqrt.f32 %v739_v56  ;;  %v737_v59 = vmul.f32 0.0078125, %v733_v58 }
 0x14d   : > { %3479 = vrsqrt.f32 %v740_v57 }
 0x14e   : > { %v741_v60 = vadd.f32 1e-05, %v737_v59 }
 0x150   : > { %3481 = vrsqrt.f32 %v741_v60 }
 0x155   : > { %v3476_v61 = vpop.eup %3475 }
 0x156   : > { %v746_v62 = vmul.f32 %v3476_v61, %v3792_v14 }
 0x158   : > { %v756_v3 = vmul.f32 %v2983_v63, %v746_v62 }
 0x159   : > { %v3478_v0 = vpop.eup %3477 }
 0x15a   : > { %v3480_v1 = vpop.eup %3479  ;;  %v747_v2 = vmul.f32 %v3478_v0, %v3798_v21  ;;  %v766_v8 = vadd.f32 %v2984_v4, %v756_v3  ;;  %v816_v21 = vsub.s32 2, %v3853_v19  ;;  %v1053_v3 = vadd.s32 8, %v3853_v19 }
 0x15b   : > { %v748_v5 = vmul.f32 %v3480_v1, %v3794_v15  ;;  %v3612_v15 = vmov 0.0  }
 0x15c   : > { %v757_v6 = vmul.f32 %v2983_v63, %v747_v2  ;;  %3233 = vmatprep.subr.bf16.mxu0 %v3612_v15  ;;  %3245 = vmatprep.subr.bf16.mxu1 %v3612_v15  ;;  %v1055_v2 = vand.u32 127, %v806_v18 }
 0x15d   : > { %v3482_v7 = vpop.eup %3481  ;;  %v758_v11 = vmul.f32 %v2983_v63, %v748_v5  ;;  %v3615_v5 = vmov -1e+30  }
 0x15e   : > { %v767_v9 = vadd.f32 %v2984_v4, %v757_v6  ;;  %v749_v10 = vmul.f32 %v3482_v7, %v3800_v22  ;;  %v804_v22 = vld [vmem:[%s3746_s29] sm:$0x7]  ;;  %s3614_s29 = smov 64   ;;  %vm1056_vm2 = vcmp.le.s32.totalorder %v1055_v2, %v3853_v19  ;;  %vm1057_vm3 = vcmp.le.s32.totalorder %v1055_v2, %v1053_v3 }
 0x15f   : > { %v768_v14 = vadd.f32 %v2984_v4, %v758_v11  ;;  %v809_v25 = vrot.slane %v804_v22, %v808_v20  ;;  %v817_v26 = vrot.slane %v804_v22, %v816_v21  ;;  %v813_v28 = vrot.slane %v804_v22, %v812_v23 }
 0x160   : > { %v770_v12 = vpack.c.bf16 %v767_v9, %v766_v8  ;;  %v759_v13 = vmul.f32 %v2983_v63, %v749_v10  ;;  %v1058_v6 = vsel %vm1056_vm2, 0.0, %v3615_v5  ;;  %v1059_v11 = vsel %vm1057_vm3, 0.0, %v3615_v5 }
 0x162   : > { %982 = vmatmul.mubr.bf16.vlgmr.msra.gmra.mxu0 %v770_v12  ;;  %3229 = vmatprep.mubr.bf16.mxu1 %v770_v12  ;;  %v769_v16 = vadd.f32 %v2984_v4, %v759_v13 }
 0x163   : > { %991 = vmatprep.mubr.bf16.mxu0 %v3611_v43 }
 0x164   : > { %v771_v17 = vpack.c.bf16 %v769_v16, %v768_v14 }
 0x166   : > { %3230 = vmatmul.mubr.bf16.vlgmr.msra.gmra.mxu1 %v771_v17 }
 0x167   : > { %3247 = vmatprep.mubr.msk.bf16.mxu1 %vm3613_vm0, %v3612_v15 }
 0x16a   : > { %992 = vmatmul.mubr.bf16.gmra.mxu0 %v771_v17 }
 0x16b   : > { %3235 = vmatprep.mubr.msk.bf16.mxu0 %vm3613_vm0, %v3612_v15 }
 0x222   : > { %v983_v24 = vpop.f32.mrf.mxu0 }
 0x223   : > { %v984_v31 = vadd.f32 %v983_v24, %v809_v25 }
 0x224   : > { %v985_v27 = vpop.f32.mrf.mxu0 }
 0x225   : > { %v986_v36 = vadd.f32 %v985_v27, %v813_v28 }
 0x226   : > { %v987_v29 = vpop.f32.mrf.mxu0  ;;  %v3231_v30 = vpop.f32.mrf.mxu1 }
 0x227   : > { %v988_v32 = vadd.f32 %v987_v29, %v809_v25  ;;  %v1045_v33 = vadd.f32 %v3231_v30, %v817_v26 }
 0x228   : > { %v989_v34 = vpop.f32.mrf.mxu0  ;;  %v1036_v35 = vpop.f32.mrf.mxu1 }
 0x229   : > { %v1060_v37 = vpack.c.bf16 %v988_v32, %v984_v31  ;;  %v990_v38 = vadd.f32 %v989_v34, %v813_v28  ;;  %v1037_v53 = vadd.f32 %v1036_v35, %v817_v26 }
 0x22a   : > { %v993_v39 = vpop.f32.mrf.mxu0  ;;  %v3232_v40 = vpop.f32.mrf.mxu1 }
 0x22b   : > { %v1061_v41 = vpack.c.bf16 %v990_v38, %v986_v36  ;;  %v1048_v42 = vadd.f32 %v3232_v40, %v817_v26  ;;  %1184 = vrot.lane.b32.xlu1 %v1060_v37, %s3614_s29  ;;  %v994_v57 = vadd.f32 %v993_v39, %v809_v25 }
 0x22c   : > { %v995_v44 = vpop.f32.mrf.mxu0  ;;  %v1039_v46 = vpop.f32.mrf.mxu1 }
 0x22d   : > { %v3866_v45 = vpack.c.bf16 %v1048_v42, %v1045_v33  ;;  %1187 = vrot.lane.b32.xlu0 %v1061_v41, %s3614_s29  ;;  %v1067_v47 = vsel %vm1062_vm1, %v1061_v41, 0  ;;  %v1040_v49 = vadd.f32 %v1039_v46, %v817_v26  ;;  %v996_v51 = vadd.f32 %v995_v44, %v813_v28 }
 0x22e   : > { %v997_v48 = vpop.f32.mrf.mxu0  ;;  %3234 = vmatpush3.bf16.xpose.msra.mxu0 %v1067_v47 }
 0x22f   : > { %3239 = vmatprep.subr.bf16.mxu0 %v3612_v15  ;;  %v998_v54 = vadd.f32 %v997_v48, %v809_v25  ;;  %v3871_v56 = vpack.c.bf16 %v1040_v49, %v1037_v53 }
 0x230   : > { %v999_v50 = vpop.f32.mrf.mxu0 }
 0x231   : > { %v1000_v52 = vadd.f32 %v999_v50, %v813_v28  ;;  %v1321_v58 = vpack.c.bf16 %v998_v54, %v994_v57 }
 0x233   : > { %v1322_v55 = vpack.c.bf16 %v1000_v52, %v996_v51 }
 0x235   : > { %3236 = vmatmul.mubr.msk.bf16.vlgmr.msra.gmra.mxu0 %vm1062_vm1, %v1060_v37  ;;  %1446 = vrot.lane.b32.xlu1 %v1322_v55, %s3614_s29  ;;  %v1327_v62 = vsel %vm1062_vm1, %v1322_v55, 0 }
 0x236   : > { %3240 = vmatpush3.bf16.msra.mxu0 %v3871_v56  ;;  %3241 = vmatprep.mubr.msk.bf16.mxu0 %vm3613_vm0, %v3612_v15 }
 0x237   : > { %3251 = vmatprep.subr.bf16.mxu0 %v3612_v15 }
 0x239   : > { %1443 = vrot.lane.b32.xlu1 %v1321_v58, %s3614_s29 }
 0x29d   : > { %v1185_v61 = vpop.permute.xlu1 %1184 }
 0x29f   : > { %v1188_v59 = vpop.permute.xlu0 %1187 }
 0x2a0   : > { %v1193_v60 = vsel %vm1062_vm1, %v1188_v59, 0 }
 0x2a1   : > { %3246 = vmatpush3.bf16.xpose.msra.mxu1 %v1193_v60 }
 0x2a2   : > { %3257 = vmatprep.subr.bf16.mxu1 %v3612_v15 }
 0x2a7   : > { %v1447_v63 = vpop.permute.xlu1 %1446 }
 0x2a8   : > { %3248 = vmatmul.mubr.msk.bf16.vlgmr.msra.gmra.mxu1 %vm1062_vm1, %v1185_v61  ;;  %v1452_v0 = vsel %vm1062_vm1, %v1447_v63, 0 }
 0x2a9   : > { %3258 = vmatpush3.bf16.xpose.msra.mxu1 %v1327_v62  ;;  %3259 = vmatprep.mubr.msk.bf16.mxu1 %vm3613_vm0, %v3612_v15 }
 0x2aa   : > { %3269 = vmatprep.subr.bf16.mxu1 %v3612_v15 }
 0x2ab   : > { %v1444_v1 = vpop.permute.xlu1 %1443 }
 0x2b0   : > { %3260 = vmatmul.mubr.msk.bf16.vlgmr.msra.gmra.mxu1 %vm1062_vm1, %v1321_v58 }
 0x2b1   : > { %3270 = vmatpush3.bf16.xpose.msra.mxu1 %v1452_v0  ;;  %3271 = vmatprep.mubr.msk.bf16.mxu1 %vm3613_vm0, %v3612_v15 }
 0x2b8   : > { %3272 = vmatmul.mubr.msk.bf16.vlgmr.msra.gmra.mxu1 %vm1062_vm1, %v1444_v1 }
 0x2f5   : > { %v1103_v4 = vpop.f32.mrf.mxu0 }
 0x2f6   : > { %v1110_v7 = vmul.f32 0.125, %v1103_v4 }
 0x2f7   : > { %v3237_v8 = vpop.f32.mrf.mxu0 }
 0x2f8   : > { %v1112_v9 = vadd.f32 %v1110_v7, %v1058_v6 }
 0x2f9   : > { %v1106_v10 = vpop.f32.mrf.mxu0 }
 0x2fa   : > { %v1111_v12 = vmul.f32 0.125, %v1106_v10  ;;  %v1115_v13 = vsel %vm1114_vm4, %v1112_v9, -inf }
 0x2fb   : > { %1116 = vmax.xlane.f32.xlu0 %v1115_v13  ;;  %v3238_v14 = vpop.f32.mrf.mxu0 }
 0x2fc   : > { %v1113_v16 = vadd.f32 %v1111_v12, %v1059_v11 }
 0x2fe   : > { %v1118_v17 = vsel %vm1114_vm4, %v1113_v16, -inf }
 0x2ff   : > { %1119 = vmax.xlane.f32.xlu1 %v1118_v17 }
 0x368   : > { %v1229_v18 = vpop.f32.mrf.mxu1 }
 0x369   : > { %v1236_v22 = vmul.f32 0.125, %v1229_v18 }
 0x36a   : > { %v3249_v24 = vpop.f32.mrf.mxu1 }
 0x36b   : > { %v1238_v25 = vadd.f32 %v1236_v22, %v1058_v6 }
 0x36c   : > { %v1232_v26 = vpop.f32.mrf.mxu1 }
 0x36d   : > { %v1237_v27 = vmul.f32 0.125, %v1232_v26  ;;  %v1240_v28 = vsel %vm1114_vm4, %v1238_v25, -inf }
 0x36e   : > { %1241 = vmax.xlane.f32.xlu0 %v1240_v28  ;;  %v3250_v29 = vpop.f32.mrf.mxu1 }
 0x36f   : > { %v1239_v30 = vadd.f32 %v1237_v27, %v1059_v11 }
 0x370   : > { %v1363_v31 = vpop.f32.mrf.mxu1 }
 0x371   : > { %v1370_v32 = vmul.f32 0.125, %v1363_v31  ;;  %v1243_v33 = vsel %vm1114_vm4, %v1239_v30, -inf }
 0x372   : > { %1244 = vmax.xlane.f32.xlu0 %v1243_v33  ;;  %v3261_v34 = vpop.f32.mrf.mxu1 }
 0x373   : > { %v1372_v35 = vadd.f32 %v1370_v32, %v1058_v6 }
 0x374   : > { %v1366_v36 = vpop.f32.mrf.mxu1 }
 0x375   : > { %v1371_v37 = vmul.f32 0.125, %v1366_v36  ;;  %v1374_v38 = vsel %vm1114_vm4, %v1372_v35, -inf }
 0x376   : > { %1375 = vmax.xlane.f32.xlu0 %v1374_v38  ;;  %v3262_v39 = vpop.f32.mrf.mxu1 }
 0x377   : > { %v1373_v40 = vadd.f32 %v1371_v37, %v1059_v11 }
 0x378   : > { %v1488_v41 = vpop.f32.mrf.mxu1 }
 0x379   : > { %v1495_v42 = vmul.f32 0.125, %v1488_v41  ;;  %v1377_v44 = vsel %vm1114_vm4, %v1373_v40, -inf }
 0x37a   : > { %1378 = vmax.xlane.f32.xlu1 %v1377_v44  ;;  %v3273_v46 = vpop.f32.mrf.mxu1  ;;  %v3387_v44 = vld [vmem:[%s3732_s20 + $0x38] sm:$0xff]  }
 0x37b   : > { %v1497_v47 = vadd.f32 %v1495_v42, %v1058_v6  ;;  %v3388_v46 = vld [vmem:[%s3732_s20 + $0x30] sm:$0xff]   ;;  %3281 = vmatprep.subr.bf16.mxu1 %v3387_v44 }
 0x37c   : > { %v1491_v48 = vpop.f32.mrf.mxu1  ;;  %3282 = vmatpush3.bf16.msra.mxu1 %v3387_v44 }
 0x37d   : > { %v1496_v49 = vmul.f32 0.125, %v1491_v48  ;;  %v1499_v50 = vsel %vm1114_vm4, %v1497_v47, -inf  ;;  %3283 = vmatprep.subr.bf16.mxu1 %v3388_v46 }
 0x37e   : > { %1500 = vmax.xlane.f32.xlu0 %v1499_v50  ;;  %v3274_v51 = vpop.f32.mrf.mxu1  ;;  %v3390_v50 = vld [vmem:[%s3732_s20 + $0x20] sm:$0xff]  }
 0x37f   : > { %v1498_v52 = vadd.f32 %v1496_v49, %v1059_v11  ;;  %v3391_v51 = vld [vmem:[%s3732_s20 + $0x18] sm:$0xff]  }
 0x380   : > { %3284 = vmatpush3.bf16.msra.mxu1 %v3388_v46  ;;  %v3555_v46 = vld [vmem:[#allocation2 + $0x10] sm:$0xff] }
 0x381   : > { %v1502_v53 = vsel %vm1114_vm4, %v1498_v52, -inf }
 0x382   : > { %1503 = vmax.xlane.f32.xlu1 %v1502_v53  ;;  %v3392_v53 = vld [vmem:[%s3732_s20 + $0x10] sm:$0xff]  }
 0x384   : > { %v1117_v54 = vpop.xlane.xlu0 %1116 }
 0x385   : > { %v1121_v55 = vsub.f32 %v1112_v9, %v1117_v54 }
 0x387   : > { %v1123_v57 = vmul.f32 1.442695, %v1121_v55 }
 0x388   : > { %v1120_v58 = vpop.xlane.xlu1 %1119 }
 0x389   : > { %v1122_v59 = vsub.f32 %v1113_v16, %v1120_v58  ;;  %3483 = vpow2.f32 %v1123_v57 }
 0x38b   : > { %v1125_v60 = vmul.f32 1.442695, %v1122_v59 }
 0x38d   : > { %3485 = vpow2.f32 %v1125_v60 }
 0x393   : > { %1519 = vrot.lane.b32.xlu1 %v3866_v45, %s3614_s29 }
 0x394   : > { %1260 = vrot.lane.b32.xlu0 %v3871_v56, %s3614_s29 }
 0x396   : > { %v3484_v61 = vpop.eup %3483 }
 0x39a   : > { %v3486_v62 = vpop.eup %3485 }
 0x39b   : > { %v1133_v63 = vpack.c.bf16 %v3486_v62, %v3484_v61 }
 0x39d   : > { %3242 = vmatmul.mubr.msk.bf16.vlgmr.msra.gmra.mxu0 %vm1114_vm4, %v1133_v63 }
 0x39e   : > { %3253 = vmatprep.mubr.msk.bf16.mxu0 %vm3613_vm0, %v3612_v15 }
 0x3f7   : > { %v1242_v0 = vpop.xlane.xlu0 %1241 }
 0x3f8   : > { %v1246_v1 = vsub.f32 %v1238_v25, %v1242_v0 }
 0x3fa   : > { %v1248_v2 = vmul.f32 1.442695, %v1246_v1 }
 0x3fb   : > { %v1245_v3 = vpop.xlane.xlu0 %1244 }
 0x3fc   : > { %3487 = vpow2.f32 %v1248_v2  ;;  %v1247_v4 = vsub.f32 %v1239_v30, %v1245_v3 }
 0x3fe   : > { %v1250_v5 = vmul.f32 1.442695, %v1247_v4 }
 0x3ff   : > { %v1376_v6 = vpop.xlane.xlu0 %1375 }
 0x400   : > { %3489 = vpow2.f32 %v1250_v5  ;;  %v1380_v7 = vsub.f32 %v1372_v35, %v1376_v6  ;;  %v1127_v35 = vsel %vm1114_vm4, %v3484_v61, 0.0  ;;  %v3393_v61 = vld [vmem:[%s3732_s20 + $0x8] sm:$0xff]   ;;  %v3394_v5 = vld [vmem:[%s3732_s20] sm:$0xff]  }
 0x402   : > { %v1382_v8 = vmul.f32 1.442695, %v1380_v7 }
 0x403   : > { %v1379_v56 = vpop.xlane.xlu1 %1378 }
 0x404   : > { %v1381_v9 = vsub.f32 %v1373_v40, %v1379_v56  ;;  %3491 = vpow2.f32 %v1382_v8 }
 0x406   : > { %v1384_v10 = vmul.f32 1.442695, %v1381_v9 }
 0x407   : > { %v1501_v11 = vpop.xlane.xlu0 %1500 }
 0x408   : > { %3493 = vpow2.f32 %v1384_v10  ;;  %v1505_v12 = vsub.f32 %v1497_v47, %v1501_v11  ;;  %v3389_v47 = vld [vmem:[%s3732_s20 + $0x28] sm:$0xff]  }
 0x409   : > { %v3488_v13 = vpop.eup %3487  ;;  %3285 = vmatprep.subr.bf16.mxu1 %v3389_v47 }
 0x40a   : > { %v1507_v14 = vmul.f32 1.442695, %v1505_v12  ;;  %v1252_v16 = vsel %vm1114_vm4, %v3488_v13, 0.0  ;;  %3286 = vmatpush3.bf16.msra.mxu1 %v3389_v47 }
 0x40b   : > { %v1504_v17 = vpop.xlane.xlu1 %1503  ;;  %1253 = vadd.xlane.f32.xlu1 %v1252_v16  ;;  %v1261_v18 = vpop.permute.xlu0 %1260  ;;  %3287 = vmatprep.subr.bf16.mxu1 %v3390_v50 }
 0x40c   : > { %3495 = vpow2.f32 %v1507_v14  ;;  %v1506_v22 = vsub.f32 %v1498_v52, %v1504_v17  ;;  %3252 = vmatpush3.bf16.msra.mxu0 %v1261_v18 }
 0x40d   : > { %v3490_v24 = vpop.eup %3489  ;;  %3263 = vmatprep.subr.bf16.mxu0 %v3612_v15 }
 0x40e   : > { %v1509_v25 = vmul.f32 1.442695, %v1506_v22  ;;  %v1255_v26 = vsel %vm1114_vm4, %v3490_v24, 0.0  ;;  %v1258_v27 = vpack.c.bf16 %v3490_v24, %v3488_v13  ;;  %3288 = vmatpush3.bf16.msra.mxu1 %v3390_v50 }
 0x40f   : > { %1256 = vadd.xlane.f32.xlu0 %v1255_v26  ;;  %v1520_v31 = vpop.permute.xlu1 %1519  ;;  %3289 = vmatprep.subr.bf16.mxu1 %v3391_v51 }
 0x410   : > { %3497 = vpow2.f32 %v1509_v25  ;;  %3254 = vmatmul.mubr.msk.bf16.vlgmr.msra.gmra.mxu0 %vm1114_vm4, %v1258_v27 }
 0x411   : > { %3264 = vmatpush3.bf16.msra.mxu0 %v3866_v45  ;;  %3265 = vmatprep.mubr.msk.bf16.mxu0 %vm3613_vm0, %v3612_v15  ;;  %v3492_v28 = vpop.eup %3491 }
 0x412   : > { %3275 = vmatprep.subr.bf16.mxu0 %v3612_v15  ;;  %v1386_v37 = vsel %vm1114_vm4, %v3492_v28, 0.0  ;;  %3290 = vmatpush3.bf16.msra.mxu1 %v3391_v51  ;;  %v3556_v51 = vld [vmem:[#allocation2 + $0x8] sm:$0xff] }
 0x413   : > { %3291 = vmatprep.subr.bf16.mxu1 %v3392_v53 }
 0x415   : > { %v3494_v29 = vpop.eup %3493 }
 0x416   : > { %v1392_v30 = vpack.c.bf16 %v3494_v29, %v3492_v28  ;;  %v1389_v38 = vsel %vm1114_vm4, %v3494_v29, 0.0  ;;  %3292 = vmatpush3.bf16.msra.mxu1 %v3392_v53 }
 0x417   : > { %3293 = vmatprep.subr.bf16.mxu1 %v3393_v61 }
 0x418   : > { %3266 = vmatmul.mubr.msk.bf16.vlgmr.msra.gmra.mxu0 %vm1114_vm4, %v1392_v30 }
 0x419   : > { %v3496_v32 = vpop.eup %3495  ;;  %3276 = vmatpush3.bf16.msra.mxu0 %v1520_v31  ;;  %3277 = vmatprep.mubr.msk.bf16.mxu0 %vm3613_vm0, %v3612_v15  ;;  %v1130_v15 = vsel %vm1114_vm4, %v3486_v62, 0.0 }
 0x41a   : > { %v1511_v33 = vsel %vm1114_vm4, %v3496_v32, 0.0  ;;  %3294 = vmatpush3.bf16.msra.mxu1 %v3393_v61 }
 0x41b   : > { %1512 = vadd.xlane.f32.xlu0 %v1511_v33  ;;  %3295 = vmatprep.subr.bf16.mxu1 %v3394_v5 }
 0x41d   : > { %v3498_v45 = vpop.eup %3497 }
 0x41e   : > { %v1514_v34 = vsel %vm1114_vm4, %v3498_v45, 0.0  ;;  %v1517_v36 = vpack.c.bf16 %v3498_v45, %v3496_v32  ;;  %3296 = vmatpush3.bf16.msra.mxu1 %v3394_v5 }
 0x41f   : > { %1515 = vadd.xlane.f32.xlu1 %v1514_v34  ;;  %1128 = vadd.xlane.f32.xlu0 %v1127_v35 }
 0x420   : > { %3278 = vmatmul.mubr.msk.bf16.vlgmr.msra.gmra.mxu0 %vm1114_vm4, %v1517_v36 }
 0x421   : > { %2024 = vmatprep.mubr.bf16.mxu0 %v3611_v43 }
 0x423   : > { %1131 = vadd.xlane.f32.xlu1 %v1130_v15  ;;  %1387 = vadd.xlane.f32.xlu0 %v1386_v37 }
 0x427   : > { %1390 = vadd.xlane.f32.xlu1 %v1389_v38 }
 0x45d   : > { %v3929_v39 = vpop.f32.mrf.mxu0 }
 0x45f   : > { %v3243_v40 = vpop.f32.mrf.mxu0 }
 0x461   : > { %v3931_v41 = vpop.f32.mrf.mxu0 }
 0x463   : > { %v3244_v42 = vpop.f32.mrf.mxu0 }
 0x494   : > { %v1254_v48 = vpop.xlane.xlu1 %1253 }
 0x495   : > { %3499 = vrcp.f32 %v1254_v48  ;;  %v3025_v48 = vld [vmem:[%s4304_s14] ss:$0 sm:$0xff] }
 0x498   : > { %v1257_v49 = vpop.xlane.xlu0 %1256 }
 0x499   : > { %3501 = vrcp.f32 %v1257_v49 }
 0x4a2   : > { %v3500_v55 = vpop.eup %3499 }
 0x4a4   : > { %v1513_v57 = vpop.xlane.xlu0 %1512 }
 0x4a5   : > { %3503 = vrcp.f32 %v1513_v57  ;;  %v3558_v57 = vld [vmem:[#allocation2 + $0x18] sm:$0xff] }
 0x4a6   : > { %v3502_v58 = vpop.eup %3501 }
 0x4a8   : > { %v1516_v59 = vpop.xlane.xlu1 %1515  ;;  %v1129_v16 = vpop.xlane.xlu0 %1128 }
 0x4a9   : > { %3505 = vrcp.f32 %v1516_v59 }
 0x4aa   : > { %3507 = vrcp.f32 %v1129_v16 }
 0x4ac   : > { %v1132_v17 = vpop.xlane.xlu1 %1131  ;;  %v1388_v18 = vpop.xlane.xlu0 %1387 }
 0x4ad   : > { %3509 = vrcp.f32 %v1132_v17 }
 0x4ae   : > { %3511 = vrcp.f32 %v1388_v18  ;;  %v3403_v18 = vld [vmem:[%s3760_s3 + $0xc4] ss:$16 sps:$4 sm:$0xff]  }
 0x4b0   : > { %v1391_v25 = vpop.xlane.xlu1 %1390 }
 0x4b1   : > { %3513 = vrcp.f32 %v1391_v25  ;;  %v3404_v25 = vld [vmem:[%s3760_s3 + $0xc8] ss:$16 sps:$4 sm:$0xff]  }
 0x4b2   : > { %v3504_v56 = vpop.eup %3503 }
 0x4b6   : > { %v3506_v9 = vpop.eup %3505 }
 0x4b7   : > { %v3508_v22 = vpop.eup %3507 }
 0x4b8   : > { %v1181_v29 = vmul.f32 %v3508_v22, %v3929_v39  ;;  %v3406_v22 = vld [vmem:[%s3760_s3 + $0xcc] ss:$16 sps:$4 sm:$0xff]  }
 0x4ba   : > { %v3510_v24 = vpop.eup %3509 }
 0x4bb   : > { %v1182_v30 = vmul.f32 %v3510_v24, %v3931_v41  ;;  %v3512_v45 = vpop.eup %3511  ;;  %v3401_v24 = vld [vmem:[%s3760_s3 + $0xc0] ss:$16 sps:$4 sm:$0xff]  }
 0x4be   : > { %v3514_v34 = vpop.eup %3513 }
 0x4d0   : > { %v1300_v52 = vpop.f32.mrf.mxu0 }
 0x4d1   : > { %v1309_v62 = vmul.f32 %v3500_v55, %v1300_v52 }
 0x4d2   : > { %v3255_v54 = vpop.f32.mrf.mxu0 }
 0x4d3   : > { %v3557_v54 = vld [vmem:[#allocation2] sm:$0xff] }
 0x4d4   : > { %v1303_v60 = vpop.f32.mrf.mxu0 }
 0x4d5   : > { %v1310_v63 = vmul.f32 %v3502_v58, %v1303_v60 }
 0x4d6   : > { %v3256_v0 = vpop.f32.mrf.mxu0 }
 0x4d7   : > { %v3345_v1 = vpack.i.bf16 %v1310_v63, %v1309_v62  ;;  %v3395_v62 = vld [vmem:[%s3760_s3 + $0xe0] ss:$16 sps:$4 sm:$0xff]   ;;  %v3397_v63 = vld [vmem:[%s3760_s3 + $0xe4] ss:$16 sps:$4 sm:$0xff]   ;;  %v3398_v0 = vld [vmem:[%s3760_s3 + $0xe8] ss:$16 sps:$4 sm:$0xff]  }
 0x4d8   : > { %v1431_v2 = vpop.f32.mrf.mxu0  ;;  %1992 = vmatprep.subr.bf16.mxu0 %v3397_v63 }
 0x4d9   : > { %3346 = vrot.lane.b32.xlu0 %v3345_v1, %s3614_s29  ;;  %v1440_v36 = vmul.f32 %v3512_v45, %v1431_v2  ;;  %v3400_v1 = vld [vmem:[%s3760_s3 + $0xec] ss:$16 sps:$4 sm:$0xff]   ;;  %1993 = vmatpush1.bf16.msra.mxu0 %v3395_v62  ;;  %v3419_v45 = vld [vmem:[%s3760_s3 + $0x60] ss:$16 sps:$4 sm:$0xff]  }
 0x4da   : > { %v3267_v3 = vpop.f32.mrf.mxu0  ;;  %2045 = vmatprep.subr.bf16.mxu1 %v3400_v1  ;;  %1994 = vmatprep.subr.bf16.mxu0 %v3403_v18 }
 0x4dc   : > { %v1434_v4 = vpop.f32.mrf.mxu0 }
 0x4dd   : > { %v1441_v15 = vmul.f32 %v3514_v34, %v1434_v4  ;;  %1995 = vmatpush1.bf16.msra.mxu0 %v3401_v24  ;;  %v3421_v34 = vld [vmem:[%s3760_s3 + $0x64] ss:$16 sps:$4 sm:$0xff]  }
 0x4de   : > { %v3268_v6 = vpop.f32.mrf.mxu0 }
 0x4e0   : > { %v1559_v7 = vpop.f32.mrf.mxu0 }
 0x4e1   : > { %v1568_v11 = vmul.f32 %v3504_v56, %v1559_v7 }
 0x4e2   : > { %v3279_v8 = vpop.f32.mrf.mxu0 }
 0x4e4   : > { %v1562_v10 = vpop.f32.mrf.mxu0 }
 0x4e5   : > { %v1569_v12 = vmul.f32 %v3506_v9, %v1562_v10 }
 0x4e6   : > { %v3280_v13 = vpop.f32.mrf.mxu0 }
 0x4e7   : > { %v3350_v14 = vpack.i.bf16 %v1569_v12, %v1568_v11 }
 0x4e9   : > { %3351 = vrot.lane.b32.xlu1 %v3350_v14, %s3614_s29 }
 0x54b   : > { %v3347_v26 = vpop.permute.xlu0 %3346 }
 0x54c   : > { %v3349_v27 = vunpack.i.h.bf16 %v3347_v26  ;;  %v3348_v28 = vunpack.i.l.bf16 %v3347_v26  ;;  %v3409_v26 = vld [vmem:[%s3760_s3 + $0xa4] ss:$16 sps:$4 sm:$0xff]  }
 0x54d   : > { %1996 = vmatprep.subr.bf16.mxu0 %v3409_v26 }
 0x54e   : > { %v1319_v31 = vsel %vm1062_vm1, %v1181_v29, %v3348_v28  ;;  %v1320_v32 = vsel %vm1062_vm1, %v1182_v30, %v3349_v27  ;;  %v3412_v27 = vld [vmem:[%s3760_s3 + $0xac] ss:$16 sps:$4 sm:$0xff]   ;;  %v3407_v28 = vld [vmem:[%s3760_s3 + $0xa0] ss:$16 sps:$4 sm:$0xff]   ;;  %v3410_v29 = vld [vmem:[%s3760_s3 + $0xa8] ss:$16 sps:$4 sm:$0xff]  }
 0x54f   : > { %v1580_v33 = vpack.c.bf16 %v1320_v32, %v1319_v31  ;;  %1997 = vmatpush1.bf16.msra.mxu0 %v3407_v28  ;;  %v3415_v30 = vld [vmem:[%s3760_s3 + $0x84] ss:$16 sps:$4 sm:$0xff]   ;;  %v3418_v31 = vld [vmem:[%s3760_s3 + $0x8c] ss:$16 sps:$4 sm:$0xff]   ;;  %v3413_v32 = vld [vmem:[%s3760_s3 + $0x80] ss:$16 sps:$4 sm:$0xff]  }
 0x550   : > { %1998 = vmatprep.subr.bf16.mxu0 %v3415_v30  ;;  %v3444_v28 = vld [vmem:[%s3771_s13 + $0xf8] sm:$0xff]  }
 0x551   : > { %3297 = vmatprep.mubr.bf16.mxu1 %v1580_v33  ;;  %v3416_v33 = vld [vmem:[%s3760_s3 + $0x88] ss:$16 sps:$4 sm:$0xff]  }
 0x552   : > { %v3446_v30 = vld [vmem:[%s3771_s13 + $0xb8] sm:$0xff]  }
 0x553   : > { %1999 = vmatpush1.bf16.msra.mxu0 %v3413_v32  ;;  %v3449_v32 = vld [vmem:[%s3771_s13 + $0x30] sm:$0xff]  }
 0x554   : > { %2000 = vmatprep.subr.bf16.mxu0 %v3421_v34  ;;  %v3452_v34 = vld [vmem:[%s3771_s13 + $0xe8] sm:$0xff]  }
 0x557   : > { %2001 = vmatpush1.bf16.msra.mxu0 %v3419_v45  ;;  %v3451_v45 = vld [vmem:[%s3771_s13 + $0x68] sm:$0xff]  }
 0x55b   : > { %v3352_v35 = vpop.permute.xlu1 %3351 }
 0x55c   : > { %v3354_v37 = vunpack.i.h.bf16 %v3352_v35  ;;  %v3353_v38 = vunpack.i.l.bf16 %v3352_v35  ;;  %v3422_v35 = vld [vmem:[%s3760_s3 + $0x68] ss:$16 sps:$4 sm:$0xff]  }
 0x55e   : > { %v1579_v39 = vsel %vm1062_vm1, %v1441_v15, %v3354_v37  ;;  %v1578_v40 = vsel %vm1062_vm1, %v1440_v36, %v3353_v38  ;;  %v3424_v36 = vld [vmem:[%s3760_s3 + $0x6c] ss:$16 sps:$4 sm:$0xff]   ;;  %v3427_v15 = vld [vmem:[%s3760_s3 + $0x44] ss:$16 sps:$4 sm:$0xff]   ;;  %v3425_v38 = vld [vmem:[%s3760_s3 + $0x40] ss:$16 sps:$4 sm:$0xff]  }
 0x55f   : > { %v1581_v41 = vpack.c.bf16 %v1579_v39, %v1578_v40  ;;  %v3430_v37 = vld [vmem:[%s3760_s3 + $0x4c] ss:$16 sps:$4 sm:$0xff]   ;;  %2002 = vmatprep.subr.bf16.mxu0 %v3427_v15  ;;  %v3428_v39 = vld [vmem:[%s3760_s3 + $0x48] ss:$16 sps:$4 sm:$0xff]   ;;  %v3433_v40 = vld [vmem:[%s3760_s3 + $0x24] ss:$16 sps:$4 sm:$0xff]  }
 0x560   : > { %2003 = vmatpush1.bf16.msra.mxu0 %v3425_v38  ;;  %v3455_v15 = vld [vmem:[%s3771_s13 + $0x60] sm:$0xff]  }
 0x561   : > { %3298 = vmatmul.mubr.bf16.vlgmr.msra.gmra.mxu1 %v1581_v41  ;;  %v3436_v41 = vld [vmem:[%s3760_s3 + $0x2c] ss:$16 sps:$4 sm:$0xff]   ;;  %2004 = vmatprep.subr.bf16.mxu0 %v3433_v40  ;;  %v3457_v38 = vld [vmem:[%s3771_s13 + $0x20] sm:$0xff]  }
 0x562   : > { %2077 = vmatprep.mubr.bf16.mxu1 %v3611_v43  ;;  %2046 = vmatpush1.bf16.msra.mxu1 %v3398_v0  ;;  %v3459_v40 = vld [vmem:[%s3771_s13 + $0x58] sm:$0xff]  }
 0x563   : > { %2047 = vmatprep.subr.bf16.mxu1 %v3406_v22 }
 0x566   : > { %2048 = vmatpush1.bf16.msra.mxu1 %v3404_v25 }
 0x567   : > { %2049 = vmatprep.subr.bf16.mxu1 %v3412_v27 }
 0x56a   : > { %2050 = vmatpush1.bf16.msra.mxu1 %v3410_v29  ;;  %v3445_v29 = vld [vmem:[%s3771_s13 + $0x38] sm:$0xff]  }
 0x56b   : > { %2051 = vmatprep.subr.bf16.mxu1 %v3418_v31  ;;  %v3448_v31 = vld [vmem:[%s3771_s13 + $0xf0] sm:$0xff]  }
 0x56e   : > { %2052 = vmatpush1.bf16.msra.mxu1 %v3416_v33  ;;  %v3450_v33 = vld [vmem:[%s3771_s13 + $0xb0] sm:$0xff]  }
 0x56f   : > { %2053 = vmatprep.subr.bf16.mxu1 %v3424_v36  ;;  %v3454_v36 = vld [vmem:[%s3771_s13 + $0xa8] sm:$0xff]  }
 0x572   : > { %2054 = vmatpush1.bf16.msra.mxu1 %v3422_v35  ;;  %v3453_v35 = vld [vmem:[%s3771_s13 + $0x28] sm:$0xff]  }
 0x573   : > { %2055 = vmatprep.subr.bf16.mxu1 %v3430_v37  ;;  %v3456_v37 = vld [vmem:[%s3771_s13 + $0xe0] sm:$0xff]  }
 0x576   : > { %2056 = vmatpush1.bf16.msra.mxu1 %v3428_v39  ;;  %v3458_v39 = vld [vmem:[%s3771_s13 + $0xa0] sm:$0xff]  }
 0x577   : > { %2057 = vmatprep.subr.bf16.mxu1 %v3436_v41  ;;  %v3460_v41 = vld [vmem:[%s3771_s13 + $0xd8] sm:$0xff]  }
 0x621   : > { %v3299_v42 = vpop.f32.mrf.mxu1 }
 0x622   : > { %v1697_v58 = vadd.f32 %v3558_v57, %v3299_v42  ;;  %v3431_v42 = vld [vmem:[%s3760_s3 + $0x20] ss:$16 sps:$4 sm:$0xff]  }
 0x623   : > { %v1680_v44 = vpop.f32.mrf.mxu1  ;;  %2005 = vmatpush1.bf16.msra.mxu0 %v3431_v42  ;;  %v3461_v42 = vld [vmem:[%s3771_s13 + $0x18] sm:$0xff]  }
 0x624   : > { %v1695_v47 = vadd.f32 %v3555_v46, %v1680_v44  ;;  %v3964_v61 = vadd.f32 %v3025_v48, %v1697_v58  ;;  %v3434_v44 = vld [vmem:[%s3760_s3 + $0x28] ss:$16 sps:$4 sm:$0xff]   ;;  %v3439_v46 = vld [vmem:[%s3760_s3 + $0x4] ss:$16 sps:$4 sm:$0xff]  }
 0x625   : > { %v3300_v49 = vpop.f32.mrf.mxu1  ;;  %2058 = vmatpush1.bf16.msra.mxu1 %v3434_v44  ;;  %2006 = vmatprep.subr.bf16.mxu0 %v3439_v46  ;;  %v3462_v44 = vld [vmem:[%s3771_s13 + $0x98] sm:$0xff]   ;;  %v3463_v46 = vld [vmem:[%s3771_s13 + $0x50] sm:$0xff]  }
 0x626   : > { %v3955_v50 = vadd.f32 %v3025_v48, %v1695_v47  ;;  %v1698_v52 = vadd.f32 %v3556_v51, %v3300_v49  ;;  %v3442_v47 = vld [vmem:[%s3760_s3 + $0xc] ss:$16 sps:$4 sm:$0xff]   ;;  %v3440_v49 = vld [vmem:[%s3760_s3 + $0x8] ss:$16 sps:$4 sm:$0xff]  }
 0x627   : > { %v1683_v53 = vpop.f32.mrf.mxu1  ;;  %2059 = vmatprep.subr.bf16.mxu1 %v3442_v47  ;;  %v3464_v47 = vld [vmem:[%s3771_s13 + $0xd0] sm:$0xff]  }
 0x628   : > { %v1696_v55 = vadd.f32 %v3557_v54, %v1683_v53  ;;  %1712 = vadd.xlane.f32.xlu1 %v3955_v50  ;;  %v3958_v59 = vadd.f32 %v3025_v48, %v1698_v52 }
 0x629   : > { %2060 = vmatpush1.bf16.msra.mxu1 %v3440_v49  ;;  %v3466_v49 = vld [vmem:[%s3771_s13 + $0x90] sm:$0xff]  }
 0x62a   : > { %v3960_v60 = vadd.f32 %v3025_v48, %v1696_v55  ;;  %v3437_v48 = vld [vmem:[%s3760_s3] ss:$16 sps:$4 sm:$0xff]   ;;  %3175 = vmatprep.subr.bf16.mxu1 %v3444_v28 }
 0x62b   : > { %2007 = vmatpush1.bf16.msra.mxu0 %v3437_v48  ;;  %v3465_v48 = vld [vmem:[%s3771_s13 + $0x10] sm:$0xff]  }
 0x62c   : > { %1718 = vadd.xlane.f32.xlu1 %v3958_v59  ;;  %1714 = vadd.xlane.f32.xlu0 %v3960_v60 }
 0x630   : > { %1716 = vadd.xlane.f32.xlu0 %v3964_v61 }
 0x6b1   : > { %v1713_v2 = vpop.xlane.xlu1 %1712 }
 0x6b2   : > { %v1720_v3 = vmul.f32 0.0078125, %v1713_v2 }
 0x6b4   : > { %v3972_v4 = vsub.f32 %v3955_v50, %v1720_v3 }
 0x6b5   : > { %v1719_v5 = vpop.xlane.xlu1 %1718  ;;  %v1715_v6 = vpop.xlane.xlu0 %1714 }
 0x6b6   : > { %v1723_v7 = vmul.f32 0.0078125, %v1719_v5  ;;  %v1721_v8 = vmul.f32 0.0078125, %v1715_v6  ;;  %v1728_v56 = vmul.f32 %v3972_v4, %v3972_v4  ;;  %v3026_v6 = vld [vmem:[%s4305_s26] ss:$0 sm:$0xff] }
 0x6b8   : > { %v3977_v9 = vsub.f32 %v3960_v60, %v1721_v8  ;;  %1732 = vadd.xlane.f32.xlu0 %v1728_v56  ;;  %v3980_v11 = vsub.f32 %v3958_v59, %v1723_v7 }
 0x6b9   : > { %v1717_v10 = vpop.xlane.xlu0 %1716 }
 0x6ba   : > { %v1722_v12 = vmul.f32 0.0078125, %v1717_v10  ;;  %v1729_v13 = vmul.f32 %v3977_v9, %v3977_v9  ;;  %v1731_v16 = vmul.f32 %v3980_v11, %v3980_v11  ;;  %v3027_v10 = vld [vmem:[%s4306_s21] ss:$0 sm:$0xff] }
 0x6bc   : > { %v3985_v14 = vsub.f32 %v3964_v61, %v1722_v12  ;;  %1734 = vadd.xlane.f32.xlu1 %v1729_v13 }
 0x6be   : > { %v1730_v17 = vmul.f32 %v3985_v14, %v3985_v14 }
 0x6c0   : > { %1738 = vadd.xlane.f32.xlu1 %v1731_v16  ;;  %1736 = vadd.xlane.f32.xlu0 %v1730_v17 }
 0x741   : > { %v1733_v51 = vpop.xlane.xlu0 %1732 }
 0x742   : > { %v1740_v52 = vmul.f32 0.0078125, %v1733_v51  ;;  %v3467_v51 = vld [vmem:[%s3771_s13 + $0x48] sm:$0xff]  }
 0x744   : > { %v1744_v53 = vadd.f32 1e-05, %v1740_v52  ;;  %v3468_v52 = vld [vmem:[%s3771_s13 + $0xc8] sm:$0xff]  }
 0x745   : > { %v1735_v54 = vpop.xlane.xlu1 %1734 }
 0x746   : > { %3515 = vrsqrt.f32 %v1744_v53  ;;  %v1741_v55 = vmul.f32 0.0078125, %v1735_v54  ;;  %v3469_v53 = vld [vmem:[%s3771_s13 + $0x8] sm:$0xff]  }
 0x747   : > { %v3470_v54 = vld [vmem:[%s3771_s13 + $0x88] sm:$0xff]  }
 0x748   : > { %v1745_v57 = vadd.f32 1e-05, %v1741_v55  ;;  %v3471_v55 = vld [vmem:[%s3771_s13 + $0x40] sm:$0xff]  }
 0x749   : > { %v1739_v58 = vpop.xlane.xlu1 %1738  ;;  %v1737_v62 = vpop.xlane.xlu0 %1736 }
 0x74a   : > { %3517 = vrsqrt.f32 %v1745_v57  ;;  %v1743_v63 = vmul.f32 0.0078125, %v1739_v58  ;;  %v1742_v0 = vmul.f32 0.0078125, %v1737_v62  ;;  %v3472_v57 = vld [vmem:[%s3771_s13 + $0xc0] sm:$0xff]  }
 0x74b   : > { %v3473_v58 = vld [vmem:[%s3771_s13] sm:$0xff]  }
 0x74c   : > { %v1747_v1 = vadd.f32 1e-05, %v1743_v63  ;;  %v1746_v2 = vadd.f32 1e-05, %v1742_v0  ;;  %v3474_v62 = vld [vmem:[%s3771_s13 + $0x80] sm:$0xff]   ;;  %v1826_v0 = vsub.s32 3, %v3853_v19 }
 0x74d   : > { %v1810_v63 = vld [vmem:[%s3766_s17] sm:$0xf] }
 0x74e   : > { %3519 = vrsqrt.f32 %v1747_v1  ;;  %v4071_v1 = vrot.slane %v1810_v63, %v808_v20 }
 0x74f   : > { %3521 = vrsqrt.f32 %v1746_v2  ;;  %v4075_v2 = vrot.slane %v1810_v63, %v816_v21 }
 0x753   : > { %v3516_v3 = vpop.eup %3515 }
 0x754   : > { %v1752_v5 = vmul.f32 %v3516_v3, %v3972_v4  ;;  %v4079_v3 = vrot.slane %v1810_v63, %v812_v23 }
 0x756   : > { %v1762_v56 = vmul.f32 %v3026_v6, %v1752_v5  ;;  %v4081_v5 = vrot.slane %v1810_v63, %v1826_v0 }
 0x757   : > { %v3518_v7 = vpop.eup %3517 }
 0x758   : > { %v1753_v8 = vmul.f32 %v3518_v7, %v3977_v9  ;;  %v1772_v17 = vadd.f32 %v3027_v10, %v1762_v56 }
 0x75a   : > { %v1763_v12 = vmul.f32 %v3026_v6, %v1753_v8 }
 0x75b   : > { %v3520_v13 = vpop.eup %3519 }
 0x75c   : > { %v3522_v16 = vpop.eup %3521  ;;  %v1773_v4 = vadd.f32 %v3027_v10, %v1763_v12  ;;  %v1755_v18 = vmul.f32 %v3520_v13, %v3980_v11 }
 0x75d   : > { %v1754_v22 = vmul.f32 %v3522_v16, %v3985_v14  ;;  %v3443_v14 = vld [vmem:[%s3771_s13 + $0x78] sm:$0xff]  }
 0x75e   : > { %v1776_v9 = vpack.c.bf16 %v1773_v4, %v1772_v17  ;;  %v1765_v24 = vmul.f32 %v3026_v6, %v1755_v18  ;;  %3147 = vmatprep.subr.bf16.mxu0 %v3443_v14 }
 0x75f   : > { %v1764_v25 = vmul.f32 %v3026_v6, %v1754_v22 }
 0x760   : > { %2025 = vmatmul.mubr.bf16.vlgmr.msra.gmra.mxu0 %v1776_v9  ;;  %2078 = vmatmul.mubr.bf16.vlgmr.msra.gmra.mxu1 %v1776_v9  ;;  %v1775_v27 = vadd.f32 %v3027_v10, %v1765_v24 }
 0x761   : > { %2034 = vmatprep.mubr.bf16.mxu0 %v3611_v43  ;;  %2087 = vmatprep.mubr.bf16.mxu1 %v3611_v43  ;;  %v1774_v26 = vadd.f32 %v3027_v10, %v1764_v25  ;;  %v3447_v43 = vld [vmem:[%s3771_s13 + $0x70] sm:$0xff]  }
 0x762   : > { %3148 = vmatpush3.bf16.msra.mxu0 %v3445_v29  ;;  %3176 = vmatpush3.bf16.msra.mxu1 %v3446_v30 }
 0x763   : > { %v1777_v11 = vpack.c.bf16 %v1775_v27, %v1774_v26  ;;  %3149 = vmatprep.subr.bf16.mxu0 %v3447_v43  ;;  %3177 = vmatprep.subr.bf16.mxu1 %v3448_v31 }
 0x766   : > { %3150 = vmatpush3.bf16.msra.mxu0 %v3449_v32  ;;  %3178 = vmatpush3.bf16.msra.mxu1 %v3450_v33 }
 0x767   : > { %3151 = vmatprep.subr.bf16.mxu0 %v3451_v45  ;;  %3179 = vmatprep.subr.bf16.mxu1 %v3452_v34 }
 0x768   : > { %2035 = vmatmul.mubr.bf16.gmra.mxu0 %v1777_v11  ;;  %2088 = vmatmul.mubr.bf16.gmra.mxu1 %v1777_v11 }
 0x76a   : > { %3152 = vmatpush3.bf16.msra.mxu0 %v3453_v35  ;;  %3180 = vmatpush3.bf16.msra.mxu1 %v3454_v36 }
 0x76b   : > { %3153 = vmatprep.subr.bf16.mxu0 %v3455_v15  ;;  %3181 = vmatprep.subr.bf16.mxu1 %v3456_v37 }
 0x76e   : > { %3154 = vmatpush3.bf16.msra.mxu0 %v3457_v38  ;;  %3182 = vmatpush3.bf16.msra.mxu1 %v3458_v39 }
 0x76f   : > { %3155 = vmatprep.subr.bf16.mxu0 %v3459_v40  ;;  %3183 = vmatprep.subr.bf16.mxu1 %v3460_v41 }
 0x772   : > { %3156 = vmatpush3.bf16.msra.mxu0 %v3461_v42  ;;  %3184 = vmatpush3.bf16.msra.mxu1 %v3462_v44 }
 0x773   : > { %3157 = vmatprep.subr.bf16.mxu0 %v3463_v46  ;;  %3185 = vmatprep.subr.bf16.mxu1 %v3464_v47 }
 0x776   : > { %3158 = vmatpush3.bf16.msra.mxu0 %v3465_v48  ;;  %3186 = vmatpush3.bf16.msra.mxu1 %v3466_v49 }
 0x777   : > { %3159 = vmatprep.subr.bf16.mxu0 %v3467_v51  ;;  %3187 = vmatprep.subr.bf16.mxu1 %v3468_v52 }
 0x77a   : > { %3160 = vmatpush3.bf16.msra.mxu0 %v3469_v53  ;;  %3188 = vmatpush3.bf16.msra.mxu1 %v3470_v54 }
 0x77b   : > { %3161 = vmatprep.subr.bf16.mxu0 %v3471_v55  ;;  %3189 = vmatprep.subr.bf16.mxu1 %v3472_v57 }
 0x77e   : > { %3162 = vmatpush3.bf16.msra.mxu0 %v3473_v58  ;;  %3190 = vmatpush3.bf16.msra.mxu1 %v3474_v62 }
 0x820   : > { %v2026_v6 = vpop.f32.mrf.mxu0  ;;  %v2079_v7 = vpop.f32.mrf.mxu1 }
 0x821   : > { %v4084_v8 = vadd.f32 %v2026_v6, %v4071_v1  ;;  %v4087_v56 = vadd.f32 %v2079_v7, %v4075_v2 }
 0x822   : > { %v2028_v20 = vpop.f32.mrf.mxu0  ;;  %v2081_v10 = vpop.f32.mrf.mxu1 }
 0x823   : > { %v2098_v21 = vmul.f32 %v4084_v8, %v4084_v8  ;;  %v2100_v19 = vmul.f32 %v4087_v56, %v4087_v56  ;;  %v4094_v23 = vadd.f32 %v2028_v20, %v4079_v3  ;;  %v4097_v12 = vadd.f32 %v2081_v10, %v4081_v5 }
 0x824   : > { %v2030_v13 = vpop.f32.mrf.mxu0  ;;  %v2083_v16 = vpop.f32.mrf.mxu1 }
 0x825   : > { %v2114_v17 = vmul.f32 %v2098_v21, %v4084_v8  ;;  %v2116_v4 = vmul.f32 %v2100_v19, %v4087_v56  ;;  %v2099_v18 = vmul.f32 %v4094_v23, %v4094_v23  ;;  %v2101_v22 = vmul.f32 %v4097_v12, %v4097_v12 }
 0x826   : > { %v4106_v9 = vadd.f32 %v2030_v13, %v4071_v1  ;;  %v4109_v24 = vadd.f32 %v2083_v16, %v4075_v2  ;;  %v2032_v25 = vpop.f32.mrf.mxu0  ;;  %v2085_v26 = vpop.f32.mrf.mxu1 }
 0x827   : > { %v2130_v27 = vmul.f32 0.044715, %v2114_v17  ;;  %v2132_v11 = vmul.f32 0.044715, %v2116_v4  ;;  %v2115_v14 = vmul.f32 %v2099_v18, %v4094_v23  ;;  %v2117_v28 = vmul.f32 %v2101_v22, %v4097_v12 }
 0x828   : > { %v2102_v29 = vmul.f32 %v4106_v9, %v4106_v9  ;;  %v2104_v30 = vmul.f32 %v4109_v24, %v4109_v24  ;;  %v4118_v43 = vadd.f32 %v2032_v25, %v4079_v3  ;;  %v4121_v31 = vadd.f32 %v2085_v26, %v4081_v5  ;;  %v2036_v32 = vpop.f32.mrf.mxu0  ;;  %v2089_v33 = vpop.f32.mrf.mxu1 }
 0x829   : > { %v2146_v45 = vadd.f32 %v2130_v27, %v4084_v8  ;;  %v2148_v34 = vadd.f32 %v2132_v11, %v4087_v56  ;;  %v2131_v35 = vmul.f32 0.044715, %v2115_v14  ;;  %v2133_v36 = vmul.f32 0.044715, %v2117_v28 }
 0x82a   : > { %v2118_v15 = vmul.f32 %v2102_v29, %v4106_v9  ;;  %v2120_v37 = vmul.f32 %v2104_v30, %v4109_v24  ;;  %v2103_v38 = vmul.f32 %v4118_v43, %v4118_v43  ;;  %v2105_v39 = vmul.f32 %v4121_v31, %v4121_v31  ;;  %v2038_v46 = vpop.f32.mrf.mxu0  ;;  %v2091_v52 = vpop.f32.mrf.mxu1 }
 0x82b   : > { %v2162_v40 = vmul.f32 0.7978846, %v2146_v45  ;;  %v2164_v41 = vmul.f32 0.7978846, %v2148_v34  ;;  %v2147_v42 = vadd.f32 %v2131_v35, %v4094_v23  ;;  %v2149_v44 = vadd.f32 %v2133_v36, %v4097_v12 }
 0x82c   : > { %v2134_v47 = vmul.f32 0.044715, %v2118_v15  ;;  %v2136_v48 = vmul.f32 0.044715, %v2120_v37  ;;  %v2119_v49 = vmul.f32 %v2103_v38, %v4118_v43  ;;  %v2121_v51 = vmul.f32 %v2105_v39, %v4121_v31  ;;  %v2040_v7 = vpop.f32.mrf.mxu0  ;;  %v2093_v19 = vpop.f32.mrf.mxu1 }
 0x82d   : > { %3523 = vtanh.f32 %v2162_v40  ;;  %v2163_v53 = vmul.f32 0.7978846, %v2147_v42  ;;  %v2165_v54 = vmul.f32 0.7978846, %v2149_v44  ;;  %v4136_v55 = vadd.f32 %v2036_v32, %v4071_v1 }
 0x82e   : > { %3525 = vtanh.f32 %v2164_v41  ;;  %v2150_v57 = vadd.f32 %v2134_v47, %v4106_v9  ;;  %v2152_v58 = vadd.f32 %v2136_v48, %v4109_v24  ;;  %v2135_v62 = vmul.f32 0.044715, %v2119_v49  ;;  %v2042_v14 = vpop.f32.mrf.mxu0  ;;  %v2095_v32 = vpop.f32.mrf.mxu1 }
 0x82f   : > { %3527 = vtanh.f32 %v2163_v53  ;;  %v2137_v63 = vmul.f32 0.044715, %v2121_v51  ;;  %v2106_v0 = vmul.f32 %v4136_v55, %v4136_v55  ;;  %v4143_v6 = vadd.f32 %v2089_v33, %v4075_v2 }
 0x830   : > { %3529 = vtanh.f32 %v2165_v54  ;;  %v2166_v20 = vmul.f32 0.7978846, %v2150_v57  ;;  %v2168_v10 = vmul.f32 0.7978846, %v2152_v58  ;;  %v2151_v21 = vadd.f32 %v2135_v62, %v4118_v43 }
 0x831   : > { %v2153_v13 = vadd.f32 %v2137_v63, %v4121_v31  ;;  %v2122_v16 = vmul.f32 %v2106_v0, %v4136_v55  ;;  %v2108_v17 = vmul.f32 %v4143_v6, %v4143_v6  ;;  %v4151_v4 = vadd.f32 %v2038_v46, %v4079_v3 }
 0x832   : > { %3531 = vtanh.f32 %v2166_v20  ;;  %v2167_v18 = vmul.f32 0.7978846, %v2151_v21  ;;  %v4154_v22 = vadd.f32 %v2091_v52, %v4081_v5  ;;  %v4157_v25 = vadd.f32 %v2040_v7, %v4071_v1 }
 0x833   : > { %3533 = vtanh.f32 %v2168_v10  ;;  %v2169_v26 = vmul.f32 0.7978846, %v2153_v13  ;;  %v2138_v27 = vmul.f32 0.044715, %v2122_v16  ;;  %v2124_v11 = vmul.f32 %v2108_v17, %v4143_v6 }
 0x834   : > { %3535 = vtanh.f32 %v2167_v18  ;;  %v2107_v28 = vmul.f32 %v4151_v4, %v4151_v4  ;;  %v2109_v29 = vmul.f32 %v4154_v22, %v4154_v22  ;;  %v2110_v30 = vmul.f32 %v4157_v25, %v4157_v25 }
 0x835   : > { %3537 = vtanh.f32 %v2169_v26  ;;  %v2154_v1 = vadd.f32 %v2138_v27, %v4136_v55  ;;  %v2140_v33 = vmul.f32 0.044715, %v2124_v11  ;;  %v4168_v45 = vadd.f32 %v2093_v19, %v4075_v2 }
 0x836   : > { %v2123_v34 = vmul.f32 %v2107_v28, %v4151_v4  ;;  %v2125_v35 = vmul.f32 %v2109_v29, %v4154_v22  ;;  %v2126_v36 = vmul.f32 %v2110_v30, %v4157_v25  ;;  %v4174_v15 = vadd.f32 %v2042_v14, %v4079_v3 }
 0x837   : > { %v2170_v37 = vmul.f32 0.7978846, %v2154_v1  ;;  %v2156_v38 = vadd.f32 %v2140_v33, %v4143_v6  ;;  %v2112_v39 = vmul.f32 %v4168_v45, %v4168_v45  ;;  %v4180_v40 = vadd.f32 %v2095_v32, %v4081_v5 }
 0x838   : > { %v2139_v2 = vmul.f32 0.044715, %v2123_v34  ;;  %v2141_v41 = vmul.f32 0.044715, %v2125_v35  ;;  %v2142_v42 = vmul.f32 0.044715, %v2126_v36  ;;  %v2111_v44 = vmul.f32 %v4174_v15, %v4174_v15 }
 0x839   : > { %v2172_v46 = vmul.f32 0.7978846, %v2156_v38  ;;  %v2128_v47 = vmul.f32 %v2112_v39, %v4168_v45  ;;  %v2113_v3 = vmul.f32 %v4180_v40, %v4180_v40  ;;  %3539 = vtanh.f32 %v2170_v37 }
 0x83a   : > { %v3524_v48 = vpop.eup %3523  ;;  %v2155_v49 = vadd.f32 %v2139_v2, %v4151_v4  ;;  %v2157_v51 = vadd.f32 %v2141_v41, %v4154_v22  ;;  %v2158_v5 = vadd.f32 %v2142_v42, %v4157_v25  ;;  %v2127_v52 = vmul.f32 %v2111_v44, %v4174_v15 }
 0x83b   : > { %v3526_v53 = vpop.eup %3525  ;;  %v2144_v54 = vmul.f32 0.044715, %v2128_v47  ;;  %v2129_v57 = vmul.f32 %v2113_v3, %v4180_v40  ;;  %3541 = vtanh.f32 %v2172_v46  ;;  %v2194_v16 = vadd.f32 1.0, %v3524_v48 }
 0x83c   : > { %v3528_v58 = vpop.eup %3527  ;;  %v2171_v62 = vmul.f32 0.7978846, %v2155_v49  ;;  %v2173_v63 = vmul.f32 0.7978846, %v2157_v51  ;;  %v2174_v7 = vmul.f32 0.7978846, %v2158_v5 }
 0x83d   : > { %v3530_v0 = vpop.eup %3529  ;;  %v2160_v20 = vadd.f32 %v2144_v54, %v4168_v45  ;;  %v2143_v10 = vmul.f32 0.044715, %v2127_v52  ;;  %v2145_v21 = vmul.f32 0.044715, %v2129_v57  ;;  %v2195_v19 = vadd.f32 1.0, %v3528_v58 }
 0x83e   : > { %3543 = vtanh.f32 %v2171_v62  ;;  %v2196_v27 = vadd.f32 1.0, %v3526_v53  ;;  %v2197_v36 = vadd.f32 1.0, %v3530_v0  ;;  %v2210_v37 = vmul.f32 0.5, %v2194_v16 }
 0x83f   : > { %v3532_v13 = vpop.eup %3531  ;;  %3545 = vtanh.f32 %v2173_v63  ;;  %v2176_v17 = vmul.f32 0.7978846, %v2160_v20  ;;  %v2159_v18 = vadd.f32 %v2143_v10, %v4174_v15  ;;  %v2161_v14 = vadd.f32 %v2145_v21, %v4180_v40 }
 0x840   : > { %v3534_v26 = vpop.eup %3533  ;;  %v2198_v11 = vadd.f32 1.0, %v3532_v13  ;;  %3547 = vtanh.f32 %v2174_v7  ;;  %v2211_v32 = vmul.f32 0.5, %v2195_v19  ;;  %v2212_v2 = vmul.f32 0.5, %v2196_v27 }
 0x841   : > { %v3536_v28 = vpop.eup %3535  ;;  %v2200_v29 = vadd.f32 1.0, %v3534_v26  ;;  %3549 = vtanh.f32 %v2176_v17  ;;  %v2175_v30 = vmul.f32 0.7978846, %v2159_v18  ;;  %v2177_v34 = vmul.f32 0.7978846, %v2161_v14 }
 0x842   : > { %v3538_v1 = vpop.eup %3537  ;;  %v2214_v33 = vmul.f32 0.5, %v2198_v11  ;;  %v2199_v35 = vadd.f32 1.0, %v3536_v28  ;;  %v2213_v42 = vmul.f32 0.5, %v2197_v36  ;;  %v2227_v3 = vmul.f32 %v2211_v32, %v4094_v23 }
 0x843   : > { %v2216_v38 = vmul.f32 0.5, %v2200_v29  ;;  %3551 = vtanh.f32 %v2175_v30  ;;  %v2201_v39 = vadd.f32 1.0, %v3538_v1  ;;  %v2226_v49 = vmul.f32 %v2210_v37, %v4084_v8 }
 0x844   : > { %3553 = vtanh.f32 %v2177_v34  ;;  %v2215_v41 = vmul.f32 0.5, %v2199_v35  ;;  %v2230_v44 = vmul.f32 %v2214_v33, %v4106_v9  ;;  %v2229_v51 = vmul.f32 %v2213_v42, %v4097_v12 }
 0x845   : > { %v2217_v46 = vmul.f32 0.5, %v2201_v39  ;;  %v2232_v47 = vmul.f32 %v2216_v38, %v4109_v24  ;;  %v2228_v52 = vmul.f32 %v2212_v2, %v4087_v56 }
 0x846   : > { %v2231_v48 = vmul.f32 %v2215_v41, %v4118_v43  ;;  %v3540_v54 = vpop.eup %3539  ;;  %v2242_v57 = vpack.c.bf16 %v2230_v44, %v2226_v49 }
 0x847   : > { %v2233_v5 = vmul.f32 %v2217_v46, %v4121_v31  ;;  %v2244_v62 = vpack.c.bf16 %v2232_v47, %v2228_v52  ;;  %v2202_v0 = vadd.f32 1.0, %v3540_v54 }
 0x848   : > { %v2243_v53 = vpack.c.bf16 %v2231_v48, %v2227_v3  ;;  %v3542_v9 = vpop.eup %3541 }
 0x849   : > { %v2245_v58 = vpack.c.bf16 %v2233_v5, %v2229_v51  ;;  %v2204_v7 = vadd.f32 1.0, %v3542_v9  ;;  %v2218_v26 = vmul.f32 0.5, %v2202_v0 }
 0x84a   : > { %2545 = vmatprep.mubr.bf16.mxu0 %v2243_v53 }
 0x84b   : > { %v3544_v24 = vpop.eup %3543  ;;  %2594 = vmatprep.mubr.bf16.mxu1 %v2245_v58  ;;  %2546 = vmatmul.mubr.bf16.vlgmr.msra.gmra.mxu0 %v2242_v57  ;;  %v2220_v11 = vmul.f32 0.5, %v2204_v7  ;;  %v2234_v34 = vmul.f32 %v2218_v26, %v4136_v55 }
 0x84c   : > { %v3546_v23 = vpop.eup %3545  ;;  %2595 = vmatmul.mubr.bf16.vlgmr.msra.gmra.mxu1 %v2244_v62  ;;  %v2203_v8 = vadd.f32 1.0, %v3544_v24 }
 0x84d   : > { %v3548_v43 = vpop.eup %3547  ;;  %v2205_v12 = vadd.f32 1.0, %v3546_v23  ;;  %v2236_v36 = vmul.f32 %v2220_v11, %v4143_v6 }
 0x84e   : > { %v3550_v63 = vpop.eup %3549  ;;  %v2206_v31 = vadd.f32 1.0, %v3548_v43  ;;  %v2219_v13 = vmul.f32 0.5, %v2203_v8 }
 0x84f   : > { %v2208_v56 = vadd.f32 1.0, %v3550_v63  ;;  %v2221_v18 = vmul.f32 0.5, %v2205_v12 }
 0x850   : > { %v3552_v20 = vpop.eup %3551  ;;  %v2222_v10 = vmul.f32 0.5, %v2206_v31  ;;  %v2235_v29 = vmul.f32 %v2219_v13, %v4151_v4 }
 0x851   : > { %v3554_v21 = vpop.eup %3553  ;;  %v2207_v19 = vadd.f32 1.0, %v3552_v20  ;;  %v2224_v16 = vmul.f32 0.5, %v2208_v56  ;;  %v2237_v1 = vmul.f32 %v2221_v18, %v4154_v22  ;;  %v3060_v22 = vld [vmem:[%s685_s19] ss:$0 sm:$0xff] }
 0x852   : > { %v2209_v17 = vadd.f32 1.0, %v3554_v21  ;;  %v2238_v28 = vmul.f32 %v2222_v10, %v4157_v25 }
 0x853   : > { %v2223_v27 = vmul.f32 0.5, %v2207_v19  ;;  %v2240_v32 = vmul.f32 %v2224_v16, %v4168_v45 }
 0x854   : > { %v2225_v14 = vmul.f32 0.5, %v2209_v17  ;;  %v2246_v38 = vpack.c.bf16 %v2238_v28, %v2234_v34 }
 0x855   : > { %v2239_v30 = vmul.f32 %v2223_v27, %v4174_v15  ;;  %v2248_v25 = vpack.c.bf16 %v2240_v32, %v2236_v36 }
 0x856   : > { %v2241_v33 = vmul.f32 %v2225_v14, %v4180_v40 }
 0x857   : > { %v2247_v35 = vpack.c.bf16 %v2239_v30, %v2235_v29 }
 0x858   : > { %v2249_v37 = vpack.c.bf16 %v2241_v33, %v2237_v1 }
 0x859   : > { %2553 = vmatprep.mubr.bf16.mxu0 %v2247_v35 }
 0x85a   : > { %2602 = vmatprep.mubr.bf16.mxu1 %v2249_v37  ;;  %2554 = vmatmul.mubr.bf16.gmra.mxu0 %v2246_v38 }
 0x85b   : > { %2603 = vmatmul.mubr.bf16.gmra.mxu1 %v2248_v25 }
 0x90b   : > { %v3163_v4 = vpop.f32.mrf.mxu0 }
 0x90c   : > { %v3191_v15 = vpop.f32.mrf.mxu1 }
 0x90d   : > { %v3164_v45 = vpop.f32.mrf.mxu0 }
 0x90e   : > { %v3165_v40 = vadd.f32 %v3164_v45, %v3163_v4  ;;  %v3192_v55 = vpop.f32.mrf.mxu1 }
 0x90f   : > { %v3166_v39 = vpop.f32.mrf.mxu0  ;;  %v3193_v6 = vadd.f32 %v3192_v55, %v3191_v15 }
 0x910   : > { %v2548_v2 = vadd.f32 %v3165_v40, %v3060_v22  ;;  %v3194_v41 = vpop.f32.mrf.mxu1 }
 0x911   : > { %v3167_v42 = vpop.f32.mrf.mxu0 }
 0x912   : > { %v2597_v44 = vadd.f32 %v3193_v6, %v2548_v2  ;;  %v3168_v46 = vadd.f32 %v3167_v42, %v3166_v39  ;;  %v3195_v47 = vpop.f32.mrf.mxu1 }
 0x913   : > { %v3196_v49 = vadd.f32 %v3195_v47, %v3194_v41 }
 0x914   : > { %v2611_v3 = vadd.f32 %v2597_v44, %v3955_v50  ;;  %v2551_v48 = vadd.f32 %v3168_v46, %v3060_v22 }
 0x916   : > { %2615 = vst [vmem:[#allocation2 + $0x10] sm:$0xff] %v2611_v3  ;;  %v2600_v51 = vadd.f32 %v3196_v49, %v2551_v48 }
 0x918   : > { %v2612_v5 = vadd.f32 %v2600_v51, %v3960_v60 }
 0x91a   : > { %2616 = vst [vmem:[#allocation2] sm:$0xff] %v2612_v5  ;;  %v3169_v52 = vpop.f32.mrf.mxu0 }
 0x91b   : > { %v3197_v53 = vpop.f32.mrf.mxu1 }
 0x91c   : > { %v3170_v54 = vpop.f32.mrf.mxu0 }
 0x91d   : > { %v3171_v57 = vadd.f32 %v3170_v54, %v3169_v52  ;;  %v3198_v58 = vpop.f32.mrf.mxu1 }
 0x91e   : > { %v3172_v9 = vpop.f32.mrf.mxu0  ;;  %v3199_v24 = vadd.f32 %v3198_v58, %v3197_v53 }
 0x91f   : > { %v2556_v62 = vadd.f32 %v3171_v57, %v3060_v22  ;;  %v3200_v23 = vpop.f32.mrf.mxu1 }
 0x920   : > { %v3173_v43 = vpop.f32.mrf.mxu0 }
 0x921   : > { %v2605_v8 = vadd.f32 %v3199_v24, %v2556_v62  ;;  %v3174_v63 = vadd.f32 %v3173_v43, %v3172_v9  ;;  %v3201_v50 = vpop.f32.mrf.mxu1 }
 0x922   : > { %v3202_v31 = vadd.f32 %v3201_v50, %v3200_v23 }
 0x923   : > { %v2613_v12 = vadd.f32 %v2605_v8, %v3964_v61  ;;  %v2559_v0 = vadd.f32 %v3174_v63, %v3060_v22 }
 0x925   : > { %2617 = vst [vmem:[#allocation2 + $0x18] sm:$0xff] %v2613_v12  ;;  %v2608_v60 = vadd.f32 %v3202_v31, %v2559_v0  ;;  %2622 = sbr.rel (%p3093_p5) target bundleno = 2862 (0xb2e), region = 92 }
 0x927   : > { %v2614_v7 = vadd.f32 %v2608_v60, %v3958_v59 }
 0x929   : > { %2618 = vst [vmem:[#allocation2 + $0x8] sm:$0xff] %v2614_v7 }
 0x92a   : > { %2625 = vadd.xlane.f32.xlu0 %v2611_v3  ;;  %2629 = vadd.xlane.f32.xlu1 %v2613_v12  ;;  %v3559_v29 = vld [vmem:[%s4307_s18 + $0x38] sm:$0xff]   ;;  %v3560_v30 = vld [vmem:[%s4307_s18 + $0x30] sm:$0xff]   ;;  %v3561_v32 = vld [vmem:[%s4307_s18 + $0x28] sm:$0xff]  }
 0x92b   : > { %3301 = vmatprep.subr.bf16.mxu0 %v3559_v29  ;;  %v3562_v1 = vld [vmem:[%s4307_s18 + $0x20] sm:$0xff]   ;;  %v3563_v33 = vld [vmem:[%s4307_s18 + $0x18] sm:$0xff]   ;;  %v3564_v34 = vld [vmem:[%s4307_s18 + $0x10] sm:$0xff]  }
 0x92c   : > { %3302 = vmatpush3.bf16.msra.mxu0 %v3559_v29  ;;  %v3565_v35 = vld [vmem:[%s4307_s18 + $0x8] sm:$0xff]   ;;  %v3566_v36 = vld [vmem:[%s4307_s18] sm:$0xff]  }
 0x92d   : > { %3303 = vmatprep.subr.bf16.mxu0 %v3560_v30  ;;  %v3094_v44 = vld [vmem:[%s4308_s23] ss:$0 sm:$0xff] }
 0x92e   : > { %2627 = vadd.xlane.f32.xlu0 %v2612_v5  ;;  %2631 = vadd.xlane.f32.xlu1 %v2614_v7  ;;  %v3095_v49 = vld [vmem:[%s4309_s15] ss:$0 sm:$0xff] }
 0x930   : > { %3304 = vmatpush3.bf16.msra.mxu0 %v3560_v30 }
 0x931   : > { %3305 = vmatprep.subr.bf16.mxu0 %v3561_v32 }
 0x934   : > { %3306 = vmatpush3.bf16.msra.mxu0 %v3561_v32 }
 0x935   : > { %3307 = vmatprep.subr.bf16.mxu0 %v3562_v1 }
 0x938   : > { %3308 = vmatpush3.bf16.msra.mxu0 %v3562_v1 }
 0x939   : > { %3309 = vmatprep.subr.bf16.mxu0 %v3563_v33 }
 0x93c   : > { %3310 = vmatpush3.bf16.msra.mxu0 %v3563_v33 }
 0x93d   : > { %3311 = vmatprep.subr.bf16.mxu0 %v3564_v34 }
 0x940   : > { %3312 = vmatpush3.bf16.msra.mxu0 %v3564_v34 }
 0x941   : > { %3313 = vmatprep.subr.bf16.mxu0 %v3565_v35 }
 0x944   : > { %3314 = vmatpush3.bf16.msra.mxu0 %v3565_v35 }
 0x945   : > { %3315 = vmatprep.subr.bf16.mxu0 %v3566_v36 }
 0x948   : > { %3316 = vmatpush3.bf16.msra.mxu0 %v3566_v36 }
 0x9b3   : > { %v2626_v56 = vpop.xlane.xlu0 %2625  ;;  %v2630_v20 = vpop.xlane.xlu1 %2629 }
 0x9b4   : > { %v2633_v10 = vmul.f32 0.0078125, %v2626_v56  ;;  %v2635_v21 = vmul.f32 0.0078125, %v2630_v20 }
 0x9b6   : > { %v2637_v19 = vsub.f32 %v2611_v3, %v2633_v10  ;;  %v4221_v61 = vsub.f32 %v2613_v12, %v2635_v21 }
 0x9b7   : > { %v2628_v13 = vpop.xlane.xlu0 %2627  ;;  %v2632_v16 = vpop.xlane.xlu1 %2631 }
 0x9b8   : > { %v2634_v17 = vmul.f32 0.0078125, %v2628_v13  ;;  %v2641_v18 = vmul.f32 %v2637_v19, %v2637_v19  ;;  %v2636_v59 = vmul.f32 0.0078125, %v2632_v16  ;;  %v2643_v11 = vmul.f32 %v4221_v61, %v4221_v61 }
 0x9ba   : > { %v2638_v26 = vsub.f32 %v2612_v5, %v2634_v17  ;;  %2645 = vadd.xlane.f32.xlu0 %v2641_v18  ;;  %v2640_v27 = vsub.f32 %v2614_v7, %v2636_v59 }
 0x9bc   : > { %v2642_v14 = vmul.f32 %v2638_v26, %v2638_v26  ;;  %v2644_v28 = vmul.f32 %v2640_v27, %v2640_v27 }
 0x9be   : > { %2649 = vadd.xlane.f32.xlu0 %v2643_v11  ;;  %2647 = vadd.xlane.f32.xlu1 %v2642_v14 }
 0x9c2   : > { %2651 = vadd.xlane.f32.xlu1 %v2644_v28 }
 0xa43   : > { %v2646_v37 = vpop.xlane.xlu0 %2645 }
 0xa44   : > { %v2653_v38 = vmul.f32 0.0078125, %v2646_v37 }
 0xa46   : > { %v2657_v25 = vadd.f32 1e-05, %v2653_v38 }
 0xa47   : > { %v2648_v4 = vpop.xlane.xlu1 %2647  ;;  %v2650_v15 = vpop.xlane.xlu0 %2649 }
 0xa48   : > { %3567 = vrsqrt.f32 %v2657_v25  ;;  %v2654_v22 = vmul.f32 0.0078125, %v2648_v4  ;;  %v2655_v45 = vmul.f32 0.0078125, %v2650_v15 }
 0xa4a   : > { %v2658_v40 = vadd.f32 1e-05, %v2654_v22  ;;  %v2659_v55 = vadd.f32 1e-05, %v2655_v45 }
 0xa4b   : > { %v2652_v39 = vpop.xlane.xlu1 %2651 }
 0xa4c   : > { %3569 = vrsqrt.f32 %v2658_v40  ;;  %v2656_v2 = vmul.f32 0.0078125, %v2652_v39 }
 0xa4d   : > { %3571 = vrsqrt.f32 %v2659_v55 }
 0xa4e   : > { %v2660_v6 = vadd.f32 1e-05, %v2656_v2 }
 0xa50   : > { %3573 = vrsqrt.f32 %v2660_v6 }
 0xa55   : > { %v3568_v41 = vpop.eup %3567 }
 0xa56   : > { %v2665_v42 = vmul.f32 %v3568_v41, %v2637_v19 }
 0xa58   : > { %v2675_v48 = vmul.f32 %v3094_v44, %v2665_v42 }
 0xa59   : > { %v3570_v46 = vpop.eup %3569 }
 0xa5a   : > { %v3572_v47 = vpop.eup %3571  ;;  %v2666_v3 = vmul.f32 %v3570_v46, %v2638_v26  ;;  %v2685_v53 = vadd.f32 %v3095_v49, %v2675_v48 }
 0xa5b   : > { %v2667_v51 = vmul.f32 %v3572_v47, %v4221_v61 }
 0xa5c   : > { %v2676_v5 = vmul.f32 %v3094_v44, %v2666_v3 }
 0xa5d   : > { %v3574_v52 = vpop.eup %3573  ;;  %v2677_v58 = vmul.f32 %v3094_v44, %v2667_v51 }
 0xa5e   : > { %v2686_v54 = vadd.f32 %v3095_v49, %v2676_v5  ;;  %v2668_v57 = vmul.f32 %v3574_v52, %v2640_v27 }
 0xa5f   : > { %v2687_v24 = vadd.f32 %v3095_v49, %v2677_v58 }
 0xa60   : > { %v2689_v9 = vpack.c.bf16 %v2686_v54, %v2685_v53  ;;  %v2678_v62 = vmul.f32 %v3094_v44, %v2668_v57 }
 0xa62   : > { %3317 = vmatprep.mubr.bf16.mxu0 %v2689_v9  ;;  %v2688_v23 = vadd.f32 %v3095_v49, %v2678_v62 }
 0xa64   : > { %v2690_v43 = vpack.c.bf16 %v2688_v23, %v2687_v24 }
 0xa66   : > { %3318 = vmatmul.mubr.bf16.vlgmr.msra.gmra.mxu0 %v2690_v43 }
 0xb26   : > { %v3319_v8 = vpop.f32.mrf.mxu0 }
 0xb27   : > { %2806 = vst [vmem:[#allocation3 + $0x10] sm:$0xff] %v3319_v8 }
 0xb28   : > { %v2789_v63 = vpop.f32.mrf.mxu0 }
 0xb29   : > { %2804 = vst [vmem:[#allocation3] sm:$0xff] %v2789_v63 }
 0xb2a   : > { %v3320_v50 = vpop.f32.mrf.mxu0 }
 0xb2b   : > { %2807 = vst [vmem:[#allocation3 + $0x18] sm:$0xff] %v3320_v50 }
 0xb2c   : > { %v2792_v12 = vpop.f32.mrf.mxu0 }
 0xb2d   : > { %2805 = vst [vmem:[#allocation3 + $0x8] sm:$0xff] %v2792_v12 }
 0xb2e PF: > { %p3327_p6 = scmp.eq.s32.totalorder %s3710_s22, 1  ;;  %s3616_s0 = smov [#allocation3]  }
 0xb2f   : > { %s2814_s30 = sshll.u32 %s3616_s0, 4  ;;  %s2815_s30 = int_to_ptr.vmem [resolvable:$true] %s2814_s30 }
 0xb30   : > { %s3575_s29 = scalar_lea.vmem %s2815_s30, 512  ;;  %p3582_p10 = scmp.lt.s32.totalorder %s2815_s30, %s2815_s30 }
 0xb31   : > { %p3576_p7 = scmp.ne.s32.totalorder %s2815_s30, %s3575_s29  ;;  %p3583_p11 = scmp.lt.s32.totalorder %s3575_s29, %s3575_s29 }
 0xb33   : > { %p3577_p8 = pnand %p3576_p7, %p3327_p6  ;;  %p3584_p12 = por %p3583_p11, %p3582_p10 }
 0xb35   : > { %p3578_p9 = pneg %p3577_p8 }
 0xb37   : > { %p3585_p13 = pnand %p3584_p12, %p3578_p9 }
 0xb39   : > { %3588 = shalt.err (!%p3585_p13)
}
 0xb3a   : > { %s3617_s20 = smov 128   ;;  %s3618_s25 = smov 8  }
 0xb3b   : > { %s4310_s16 = sld [smem:[#allocation13_spill]] }
 0xb41   : > { %3324 = dma.vmem_to_hbm [thread:$0]  (%p3327_p6), %s2815_s30, 512, %s4310_s16, [#allocation4], %s3617_s20, %s3617_s20, %s3618_s25  }
 0xb42   : > { %3604 = dma.done.wait (%p3327_p6), [#allocation4], 512  }
 0xb43   : > { %3606 = vsyncadd (%p3327_p6), [#allocation4], 4294966784 }
 0xb44 PF: > { %s4311_s26 = sld [smem:[#allocation6_spill]] }
 0xb4a   : > { %s27_s21 = sadd.s32 1, %s4311_s26  }
 0xb4b   : > { %p24_p0 = scmp.ge.s32.totalorder %s27_s21, 4  }
 0xb4d   :  { %26 = sbr.rel (!%p24_p0) target bundleno = 9 (0x9), region = 152 }
 0xb52   :  { %2830 = vsyncpa [#allocation4], 1 }
 0xb53   :  { %2832 = vsyncpa [#allocation4 + $0x1], 1 }

</bundles_post_ra>
